<compile_context>
chip_gen: v7x
topology: tpu7x:2x2x1
jax: 0.10.0
libtpu: 0.0.40
codegen_flags: <defaults>
</compile_context>

<pallas_src>
import functools

import jax
import jax.numpy as jnp
from jax.experimental import pallas as pl
from jax.experimental.pallas import tpu as pltpu


def _round_up(x, m):
    return ((x + m - 1) // m) * m


def _iacl_kernel(feat_t_ref, logit_ref, lbl_ref,
                 mask_ref, fs_ref, ms_ref,
                 *, pred_threshold, exact_tie_break, mxu_bf16):
    """One (core, batch-tile) grid step.

    feat_t_ref : (Cin, TB)  streamed feature, pre-transposed (bf16 or f32)
    logit_ref  : (TB, Kp)   streamed logits, f32 (padded cols = -1e30)
    lbl_ref    : (TB, 1)    streamed labels, int32 (padded rows = -1)
    mask_ref   : (TB, Kp)   per-tile tp-mask output
    fs_ref     : (Cin, Kp)  per-core accumulator  feat^T @ tp
    ms_ref     : (1, Kp)    per-core accumulator  sum(tp, axis=0)
    """
    i = pl.program_id(1)  # batch-tile index within this core ("arbitrary")

    @pl.when(i == 0)
    def _init():
        fs_ref[...] = jnp.zeros_like(fs_ref)
        ms_ref[...] = jnp.zeros_like(ms_ref)

    # ---- get_mask (per batch tile) -----------------------------------------
    logit = logit_ref[...]                                        # (TB, Kp)
    tb, kp = logit.shape
    class_iota = jax.lax.broadcasted_iota(jnp.int32, (tb, kp), 1)

    lbl = lbl_ref[...]                                            # (TB, 1)
    lbl_one = (class_iota == lbl).astype(jnp.float32)             # onehot(lbl)

    max_val = jnp.max(logit, axis=1, keepdims=True)               # (TB, 1)
    if exact_tie_break:
        # argmax with first-index tie-break (matches torch.max(dim=1))
        pred_idx = jnp.min(jnp.where(logit == max_val, class_iota, kp),
                           axis=1, keepdims=True)                 # (TB, 1)
        pred_one = (class_iota == pred_idx).astype(jnp.float32)
    else:
        pred_one = (logit == max_val).astype(jnp.float32)

    tp = lbl_one * pred_one                                       # (TB, Kp)

    if pred_threshold > 0.0:
        # Only the softmax value at the argmax column gates tp:
        #   softmax[argmax] = 1 / sum(exp(logit - max)) > thr  <=>  denom*thr < 1
        denom = jnp.sum(jnp.exp(logit - max_val), axis=1, keepdims=True)
        gate = (denom * jnp.float32(pred_threshold) < 1.0).astype(jnp.float32)
        tp = tp * gate
    # pred_threshold <= 0: softmax[argmax] >= 1/K > 0, gate is always 1 - skip.

    mask_ref[...] = tp                                            # lane-dense store

    # ---- local_avg partial sums --------------------------------------------
    ms_ref[...] += jnp.sum(tp, axis=0, keepdims=True)             # (1, Kp)

    mdt = jnp.bfloat16 if mxu_bf16 else jnp.float32
    # (Cin, TB) @ (TB, Kp): natural MXU contraction, no operand transpose.
    fs_ref[...] += jnp.dot(feat_t_ref[...].astype(mdt), tp.astype(mdt),
                           preferred_element_type=jnp.float32)


def iacl_forward(feature, lbl, logit, w, b, avg_f, *,
                 mom=0.9, pred_threshold=0.0, block_b=1024, num_cores=2,
                 mxu_bf16=True, exact_tie_break=True):
    """Pallas implementation of Inter_Affinitive_Contrastive_Loss.forward
    ('Normal' state).  Returns (loss, new_avg_f, tp_mask).

    w is the cl_fc weight pre-transposed to (n_channel, h_channel); b is the
    bias (h_channel,); avg_f is (h_channel, n_class)."""
    B, Cin = feature.shape
    H = w.shape[1]
    K = logit.shape[1]
    f32 = jnp.float32

    # lane-dense class dim; batch tile a multiple of 128 (feature is streamed
    # transposed, so the batch is the lane dim of its blocks).
    Kp = _round_up(max(K, 128), 128)
    TB = max(128, _round_up(min(block_b, max(B, 1)), 128))
    nb_total = -(-B // TB)
    ncores = num_cores if nb_total >= num_cores else 1   # v7x: 2 TCs; serial on v5e/v6e
    nb_per_core = -(-nb_total // ncores)
    B_pad = ncores * nb_per_core * TB

    feat_dt = jnp.bfloat16 if mxu_bf16 else f32
    # jnp.pad (fusible) instead of zeros().at[].set(); padded batch columns
    # contribute nothing since tp == 0 there (lbl = -1).
    feat_t_p = jnp.pad(feature.astype(feat_dt).T, ((0, 0), (0, B_pad - B)))
    logit_p = jnp.pad(logit.astype(f32), ((0, B_pad - B), (0, Kp - K)),
                      constant_values=-1e30)
    lbl_p = jnp.pad(lbl.astype(jnp.int32), (0, B_pad - B),
                    constant_values=-1).reshape(B_pad, 1)

    kernel = functools.partial(_iacl_kernel,
                               pred_threshold=float(pred_threshold),
                               exact_tie_break=bool(exact_tie_break),
                               mxu_bf16=bool(mxu_bf16))

    grid_spec = pltpu.PrefetchScalarGridSpec(
        num_scalar_prefetch=0,
        grid=(ncores, nb_per_core),               # ("parallel", "arbitrary")
        in_specs=[
            # feature^T streamed as (Cin, TB) blocks (lane-dense batch dim)
            pl.BlockSpec((Cin, TB), lambda c, i: (0, c * nb_per_core + i)),
            pl.BlockSpec((TB, Kp), lambda c, i: (c * nb_per_core + i, 0)),
            pl.BlockSpec((TB, 1), lambda c, i: (c * nb_per_core + i, 0)),
        ],
        out_specs=(
            # tp mask: one distinct block per (core, tile)
            pl.BlockSpec((TB, Kp), lambda c, i: (c * nb_per_core + i, 0)),
            # per-core partial accumulators (resident across the "arbitrary" axis)
            pl.BlockSpec((None, Cin, Kp), lambda c, i: (c, 0, 0)),
            pl.BlockSpec((None, 1, Kp), lambda c, i: (c, 0, 0)),
        ),
    )

    feat_elt = 2 if mxu_bf16 else 4
    flops = int(2 * B_pad * Cin * Kp)
    transcendentals = int(B_pad * Kp) if pred_threshold > 0.0 else 0
    bytes_accessed = int(B_pad * Cin * feat_elt + B_pad * Kp * 4 + B_pad * 4
                         + B_pad * Kp * 4 + ncores * (Cin + 1) * Kp * 4)
    cost = pl.CostEstimate(flops=flops, transcendentals=transcendentals,
                           bytes_accessed=bytes_accessed)

    # double-buffered streams + streamed mask output + resident accumulators,
    # 2x headroom, capped at 48 MiB so the request is also safe on v7x (64 MiB).
    per_step = 2 * (Cin * TB * feat_elt + TB * Kp * 4 + TB * 4) + 2 * TB * Kp * 4
    resident = Cin * Kp * 4 + 8 * Kp * 4
    vmem_limit = int(min(max(2 * (per_step + resident), 32 * 1024 * 1024),
                         48 * 1024 * 1024))

    mask_p, fs_partial, ms_partial = pl.pallas_call(
        kernel,
        out_shape=(jax.ShapeDtypeStruct((B_pad, Kp), f32),
                   jax.ShapeDtypeStruct((ncores, Cin, Kp), f32),
                   jax.ShapeDtypeStruct((ncores, 1, Kp), f32)),
        grid_spec=grid_spec,
        compiler_params=pltpu.CompilerParams(
            dimension_semantics=("parallel", "arbitrary"),
            vmem_limit_bytes=vmem_limit),
        cost_estimate=cost,
    )(feat_t_p, logit_p, lbl_p)

    # ---- tiny O(Cin*H*K) epilogue in plain XLA ------------------------------
    # proj^T @ tp == W^T @ (feat^T @ tp) + b * mask_sum  (bias as broadcast MAC)
    fs = fs_partial.sum(axis=0)[:, :K]                    # (Cin, K)
    ms = ms_partial.sum(axis=0)[:, :K]                    # (1, K)
    w_t = jnp.asarray(w, f32).T                           # (H, Cin)
    f_sum = w_t @ fs + jnp.asarray(b, f32).reshape(-1, 1) * ms
    f_mask = f_sum / (ms + 1e-12)
    has_object = jnp.where(ms > 1e-8, jnp.float32(mom), jnp.float32(1.0))
    new_avg_f = jnp.asarray(avg_f, f32) * has_object + (1.0 - has_object) * f_mask

    # state == 'Normal'  ->  loss = torch.Tensor([0])
    loss = jnp.zeros((1,), f32)
    return loss, new_avg_f, mask_p[:B, :K]


def _reference(feature, lbl, logit, w, b, avg_f, mom=0.9, pred_threshold=0.0):
    """Pure-JAX reference of the same forward pass (for sanity checking)."""
    proj = feature @ w + b.reshape(1, -1)
    K = logit.shape[1]
    lbl_one = jax.nn.one_hot(lbl, K, dtype=jnp.float32)
    pred = jnp.argmax(logit, axis=1)
    pred_one = jax.nn.one_hot(pred, K, dtype=jnp.float32)
    sm = jax.nn.softmax(logit, axis=1)
    tp = lbl_one * pred_one * (sm > pred_threshold).astype(jnp.float32)
    mask_sum = tp.sum(0, keepdims=True)
    f_mask = (proj.T @ tp) / (mask_sum + 1e-12)
    has_object = jnp.where(mask_sum > 1e-8, mom, 1.0)
    f_mem = avg_f * has_object + (1.0 - has_object) * f_mask
    return jnp.zeros((1,), jnp.float32), f_mem, tp


if __name__ == "__main__":
    # Shapes consistent with the module's forward:
    #   feature (B, n_channel), lbl (B,), logit (B, n_class)
    # B=300 with block_b=128 exercises the 2-core "parallel" split, multi-step
    # batch accumulation per core, batch padding (300 -> 512) and class
    # padding (10 -> 128).
    B, N_CHANNEL, H_CHANNEL, N_CLASS = 300, 128, 64, 10

    key = jax.random.PRNGKey(0)
    k_feat, k_logit, k_lbl, k_w, k_b, k_avg = jax.random.split(key, 6)

    feature = jax.random.normal(k_feat, (B, N_CHANNEL), dtype=jnp.float32)
    logit = jax.random.normal(k_logit, (B, N_CLASS), dtype=jnp.float32)
    lbl = jax.random.randint(k_lbl, (B,), 0, N_CLASS, dtype=jnp.int32)

    # Deterministic synthetic parameters (shapes from __init__):
    #   cl_fc: Linear(n_channel, h_channel) -> stored pre-transposed
    #   avg_f: (h_channel, n_class)
    w = jax.random.normal(k_w, (N_CHANNEL, H_CHANNEL), dtype=jnp.float32) * 0.05
    b = jax.random.normal(k_b, (H_CHANNEL,), dtype=jnp.float32) * 0.05
    avg_f = jax.random.normal(k_avg, (H_CHANNEL, N_CLASS), dtype=jnp.float32)

    loss, new_avg_f, tp_mask = jax.block_until_ready(
        iacl_forward(feature, lbl, logit, w, b, avg_f, block_b=128))

    ref_loss, ref_avg_f, ref_tp = _reference(feature, lbl, logit, w, b, avg_f)
    assert jnp.allclose(tp_mask, ref_tp)
    assert jnp.allclose(new_avg_f, ref_avg_f, rtol=1e-2, atol=1e-2)
    assert jnp.allclose(loss, ref_loss)

    print("KERNEL_OK")
</pallas_src>

<mosaic_0001>
module attributes {stable_mosaic.version = 11 : i64} {
  func.func @_iacl_kernel(%arg0: i32, %arg1: i32, %arg2: memref<128x128xbf16, #tpu.memory_space<vmem>>, %arg3: memref<128x128xf32, #tpu.memory_space<vmem>>, %arg4: memref<128x1xi32, #tpu.memory_space<vmem>>, %arg5: memref<128x128xf32, #tpu.memory_space<vmem>>, %arg6: memref<1x128x128xf32, #tpu.memory_space<vmem>>, %arg7: memref<1x1x128xf32, #tpu.memory_space<vmem>>) attributes {dimension_semantics = [#tpu.dimension_semantics<parallel>, #tpu.dimension_semantics<arbitrary>], iteration_bounds = array<i64: 2, 2>, scalar_prefetch = 0 : i64, scratch_operands = 0 : i64, tpu.core_type = #tpu.core_type<tc>, window_params = [{transform_indices = @transform_0, window_bounds = array<i64: 128, 128>}, {transform_indices = @transform_1, window_bounds = array<i64: 128, 128>}, {transform_indices = @transform_2, window_bounds = array<i64: 128, 1>}, {transform_indices = @transform_3, window_bounds = array<i64: 128, 128>}, {transform_indices = @transform_4, window_bounds = array<i64: 1, 128, 128>}, {transform_indices = @transform_5, window_bounds = array<i64: 1, 1, 128>}]} {
    %c0_i32 = arith.constant 0 : i32
    %0 = arith.cmpi eq, %arg1, %c0_i32 : i32
    %1 = arith.extui %0 : i1 to i32
    %c0_i32_0 = arith.constant 0 : i32
    %2 = arith.cmpi ne, %1, %c0_i32_0 : i32
    scf.if %2 {
      %cst_23 = arith.constant 0.000000e+00 : f32
      %41 = vector.broadcast %cst_23 : f32 to vector<128x128xf32>
      %c0_24 = arith.constant 0 : index
      %c0_25 = arith.constant 0 : index
      %c0_26 = arith.constant 0 : index
      %42 = vector.load %arg6[%c0_24, %c0_25, %c0_26] : memref<1x128x128xf32, #tpu.memory_space<vmem>>, vector<1x128x128xf32>
      %43 = vector.shape_cast %42 : vector<1x128x128xf32> to vector<128x128xf32>
      %44 = vector.shape_cast %41 : vector<128x128xf32> to vector<1x128x128xf32>
      tpu.vector_store %arg6[%c0_24, %c0_25, %c0_26], %44 {strides = array<i32>} : memref<1x128x128xf32, #tpu.memory_space<vmem>>, vector<1x128x128xf32>,
      %cst_27 = arith.constant 0.000000e+00 : f32
      %45 = vector.broadcast %cst_27 : f32 to vector<1x128xf32>
      %c0_28 = arith.constant 0 : index
      %c0_29 = arith.constant 0 : index
      %c0_30 = arith.constant 0 : index
      %46 = vector.load %arg7[%c0_28, %c0_29, %c0_30] : memref<1x1x128xf32, #tpu.memory_space<vmem>>, vector<1x1x128xf32>
      %47 = vector.shape_cast %46 : vector<1x1x128xf32> to vector<1x128xf32>
      %48 = vector.shape_cast %45 : vector<1x128xf32> to vector<1x1x128xf32>
      tpu.vector_store %arg7[%c0_28, %c0_29, %c0_30], %48 {strides = array<i32>} : memref<1x1x128xf32, #tpu.memory_space<vmem>>, vector<1x1x128xf32>,
    } else {
    }
    %c0 = arith.constant 0 : index
    %c0_1 = arith.constant 0 : index
    %3 = vector.load %arg3[%c0, %c0_1] : memref<128x128xf32, #tpu.memory_space<vmem>>, vector<128x128xf32>
    %4 = tpu.iota {dimensions = array<i32: 1>} : vector<128x128xi32>
    %c0_2 = arith.constant 0 : index
    %c0_3 = arith.constant 0 : index
    %5 = vector.load %arg4[%c0_2, %c0_3] : memref<128x1xi32, #tpu.memory_space<vmem>>, vector<128x1xi32>
    %6 = vector.broadcast %5 : vector<128x1xi32> to vector<128x128xi32>
    %7 = arith.cmpi eq, %4, %6 : vector<128x128xi32>
    %8 = arith.extui %7 : vector<128x128xi1> to vector<128x128xi32>
    %9 = arith.sitofp %8 : vector<128x128xi32> to vector<128x128xf32>
    %cst = arith.constant dense<0xFF800000> : vector<128xf32>
    %10 = vector.multi_reduction <maximumf>, %3, %cst [1] : vector<128x128xf32> to vector<128xf32>
    %11 = vector.shape_cast %10 : vector<128xf32> to vector<128x1xf32>
    %12 = vector.broadcast %11 : vector<128x1xf32> to vector<128x128xf32>
    %13 = arith.cmpf oeq, %3, %12 : vector<128x128xf32>
    %c128_i32 = arith.constant 128 : i32
    %14 = vector.broadcast %c128_i32 : i32 to vector<128x128xi32>
    %15 = arith.select %13, %4, %14 : vector<128x128xi1>, vector<128x128xi32>
    %cst_4 = arith.constant dense<2147483647> : vector<128xi32>
    %16 = vector.multi_reduction <minsi>, %15, %cst_4 [1] : vector<128x128xi32> to vector<128xi32>
    %17 = vector.shape_cast %16 : vector<128xi32> to vector<128x1xi32>
    %18 = vector.broadcast %17 : vector<128x1xi32> to vector<128x128xi32>
    %19 = arith.cmpi eq, %4, %18 : vector<128x128xi32>
    %20 = arith.extui %19 : vector<128x128xi1> to vector<128x128xi32>
    %21 = arith.sitofp %20 : vector<128x128xi32> to vector<128x128xf32>
    %22 = arith.mulf %9, %21 : vector<128x128xf32>
    %c0_5 = arith.constant 0 : index
    %c0_6 = arith.constant 0 : index
    %23 = vector.load %arg5[%c0_5, %c0_6] : memref<128x128xf32, #tpu.memory_space<vmem>>, vector<128x128xf32>
    tpu.vector_store %arg5[%c0_5, %c0_6], %22 {strides = array<i32>} : memref<128x128xf32, #tpu.memory_space<vmem>>, vector<128x128xf32>,
    %c0_7 = arith.constant 0 : index
    %c0_8 = arith.constant 0 : index
    %c0_9 = arith.constant 0 : index
    %24 = vector.load %arg7[%c0_7, %c0_8, %c0_9] : memref<1x1x128xf32, #tpu.memory_space<vmem>>, vector<1x1x128xf32>
    %25 = vector.shape_cast %24 : vector<1x1x128xf32> to vector<1x128xf32>
    %cst_10 = arith.constant dense<0.000000e+00> : vector<128xf32>
    %26 = vector.multi_reduction <add>, %22, %cst_10 [0] : vector<128x128xf32> to vector<128xf32>
    %27 = vector.shape_cast %26 : vector<128xf32> to vector<1x128xf32>
    %28 = arith.addf %25, %27 : vector<1x128xf32>
    %c0_11 = arith.constant 0 : index
    %c0_12 = arith.constant 0 : index
    %c0_13 = arith.constant 0 : index
    %29 = vector.load %arg7[%c0_11, %c0_12, %c0_13] : memref<1x1x128xf32, #tpu.memory_space<vmem>>, vector<1x1x128xf32>
    %30 = vector.shape_cast %29 : vector<1x1x128xf32> to vector<1x128xf32>
    %31 = vector.shape_cast %28 : vector<1x128xf32> to vector<1x1x128xf32>
    tpu.vector_store %arg7[%c0_11, %c0_12, %c0_13], %31 {strides = array<i32>} : memref<1x1x128xf32, #tpu.memory_space<vmem>>, vector<1x1x128xf32>,
    %c0_14 = arith.constant 0 : index
    %c0_15 = arith.constant 0 : index
    %c0_16 = arith.constant 0 : index
    %32 = vector.load %arg6[%c0_14, %c0_15, %c0_16] : memref<1x128x128xf32, #tpu.memory_space<vmem>>, vector<1x128x128xf32>
    %33 = vector.shape_cast %32 : vector<1x128x128xf32> to vector<128x128xf32>
    %c0_17 = arith.constant 0 : index
    %c0_18 = arith.constant 0 : index
    %34 = vector.load %arg2[%c0_17, %c0_18] : memref<128x128xbf16, #tpu.memory_space<vmem>>, vector<128x128xbf16>
    %35 = arith.truncf %22 : vector<128x128xf32> to vector<128x128xbf16>
    %cst_19 = arith.constant dense<0.000000e+00> : vector<128x128xf32>
    %36 = tpu.matmul %34, %35, %cst_19 {dimension_numbers = #tpu.dot_dimension_numbers<[1], [0], [0], [1], [0, 0, 1, 1], [], []>} : vector<128x128xbf16>, vector<128x128xbf16>, vector<128x128xf32> -> vector<128x128xf32>
    %37 = arith.addf %33, %36 : vector<128x128xf32>
    %c0_20 = arith.constant 0 : index
    %c0_21 = arith.constant 0 : index
    %c0_22 = arith.constant 0 : index
    %38 = vector.load %arg6[%c0_20, %c0_21, %c0_22] : memref<1x128x128xf32, #tpu.memory_space<vmem>>, vector<1x128x128xf32>
    %39 = vector.shape_cast %38 : vector<1x128x128xf32> to vector<128x128xf32>
    %40 = vector.shape_cast %37 : vector<128x128xf32> to vector<1x128x128xf32>
    tpu.vector_store %arg6[%c0_20, %c0_21, %c0_22], %40 {strides = array<i32>} : memref<1x128x128xf32, #tpu.memory_space<vmem>>, vector<1x128x128xf32>,
    return
  }
  func.func @transform_0(%arg0: i32, %arg1: i32) -> (i32, i32) {
    %c2_i32 = arith.constant 2 : i32
    %0 = arith.muli %arg0, %c2_i32 : i32
    %1 = arith.addi %0, %arg1 : i32
    %c0_i32 = arith.constant 0 : i32
    %c0_i32_0 = arith.constant 0 : i32
    return %c0_i32, %1 : i32, i32
  }
  func.func @transform_1(%arg0: i32, %arg1: i32) -> (i32, i32) {
    %c2_i32 = arith.constant 2 : i32
    %0 = arith.muli %arg0, %c2_i32 : i32
    %1 = arith.addi %0, %arg1 : i32
    %c0_i32 = arith.constant 0 : i32
    %c0_i32_0 = arith.constant 0 : i32
    return %1, %c0_i32 : i32, i32
  }
  func.func @transform_2(%arg0: i32, %arg1: i32) -> (i32, i32) {
    %c2_i32 = arith.constant 2 : i32
    %0 = arith.muli %arg0, %c2_i32 : i32
    %1 = arith.addi %0, %arg1 : i32
    %c0_i32 = arith.constant 0 : i32
    %c0_i32_0 = arith.constant 0 : i32
    return %1, %c0_i32 : i32, i32
  }
  func.func @transform_3(%arg0: i32, %arg1: i32) -> (i32, i32) {
    %c2_i32 = arith.constant 2 : i32
    %0 = arith.muli %arg0, %c2_i32 : i32
    %1 = arith.addi %0, %arg1 : i32
    %c0_i32 = arith.constant 0 : i32
    %c0_i32_0 = arith.constant 0 : i32
    return %1, %c0_i32 : i32, i32
  }
  func.func @transform_4(%arg0: i32, %arg1: i32) -> (i32, i32, i32) {
    %c0_i32 = arith.constant 0 : i32
    %c0_i32_0 = arith.constant 0 : i32
    %c0_i32_1 = arith.constant 0 : i32
    return %arg0, %c0_i32, %c0_i32_0 : i32, i32, i32
  }
  func.func @transform_5(%arg0: i32, %arg1: i32) -> (i32, i32, i32) {
    %c0_i32 = arith.constant 0 : i32
    %c0_i32_0 = arith.constant 0 : i32
    %c0_i32_1 = arith.constant 0 : i32
    return %arg0, %c0_i32, %c0_i32_0 : i32, i32, i32
  }
}

</mosaic_0001>

<bundles_post_ra>
// kernel: tpu_custom_call.1
= control target key start
LH: loop header
LB: loop body
LE: loop exit
PB: predicated region body
PF: predicated region fallthrough
CT: control target
= control target key end

     0   :  { %s2745_s0 = inlined_call_operand.hbm [shape: bf16[128,512], index: 0, kind: input, shape index: {}]   ;;  %s2746_s1 = inlined_call_operand.vmem [shape: f32[512,128], index: 1, kind: input, shape index: {}]   ;;  %s2747_s2 = inlined_call_operand.vmem [shape: s32[512,1], index: 2, kind: input, shape index: {}]   ;;  %s2748_s3 = inlined_call_operand.hbm [shape: f32[512,128], index: 3, kind: output, shape index: {0}]   ;;  %s2749_s4 = inlined_call_operand.hbm [shape: f32[2,128,128], index: 4, kind: output, shape index: {1}]   ;;  %s2750_s5 = inlined_call_operand.hbm [shape: f32[2,1,128], index: 5, kind: output, shape index: {2}]  }
   0x1   :  { %2762 = sst [smem:[#allocation22_spill]] %s2745_s0 }
   0x2   :  { %11 = vsyncpa [#allocation3], 0 }
   0x3   :  { %13 = vsyncpa [#allocation3 + $0x1], 0 }
   0x4   :  { %14 = vsyncpa [#allocation4], 0 }
   0x5   :  { %16 = vsyncpa [#allocation4 + $0x1], 0 }
   0x6   :  { %17 = vsyncpa [#allocation7], 0 }
   0x7   :  { %19 = vsyncpa [#allocation7 + $0x1], 0  ;;  %s1870_s18 = smov 0   ;;  %s1872_s19 = smov 0  }
   0x8   :  { %s1874_s20 = smov 0   ;;  %s1876_s21 = smov 0  }
   0x9   :  { %s1878_s22 = smov 0   ;;  %s1880_s23 = smov 0  }
   0xa   :  { %s1882_s24 = smov 0   ;;  %s1884_s25 = smov 0  }
   0xb   :  { %s1886_s26 = smov 0   ;;  %s1888_s27 = smov 0  }
   0xc   :  { %s1890_s28 = smov 0  }
   0xd LB: > { %2763 = sst [smem:[#allocation12_spill]] %s1794_s20  ;;  %s1926_s29 = sadd.s32 4294967295, %s1826_s28   ;;  %s1826_s28 = sphi %s1890_s28, %s25_s28   ;;  %s1822_s27 = sphi %s1888_s27, %s2797_s27   ;;  %s1818_s26 = sphi %s1886_s26, %s2796_s26   ;;  %s1814_s25 = sphi %s1884_s25, %s2795_s25   ;;  %s1810_s24 = sphi %s1882_s24, %s2794_s24   ;;  %s1806_s23 = sphi %s1880_s23, %s2793_s23   ;;  %s1802_s22 = sphi %s1878_s22, %s2792_s22   ;;  %s1798_s21 = sphi %s1876_s21, %s2791_s21   ;;  %s1794_s20 = sphi %s1874_s20, %s2790_s20   ;;  %s1790_s19 = sphi %s1872_s19, %s2799_s19   ;;  %s1786_s18 = sphi %s1870_s18, %s2798_s18  }
   0xe   : > { %2764 = sst [smem:[#allocation13_spill]] %s1798_s21  ;;  %s2751_s30 = sadd.s32 4294967294, %s1826_s28  }
   0xf   : > { %2765 = sst [smem:[#allocation14_spill]] %s1802_s22  ;;  %s34_s6 = sadd.s32 1, %s1818_s26 }
  0x10   : > { %2766 = sst [smem:[#allocation15_spill]] %s1806_s23  ;;  %s37_s7 = sadd.s32 1, %s1822_s27 }
  0x11   : > { %2767 = sst [smem:[#allocation16_spill]] %s1818_s26  ;;  %p35_p0 = scmp.ge.s32.totalorder %s34_s6, 2 }
  0x12   : > { %2768 = sst [smem:[#allocation17_spill]] %s1822_s27  ;;  %s1344_s8 = sshll.u32 %s1822_s27, 1 }
  0x13   : > { %s1933_s9 = sadd.s32 %s1818_s26, %s1344_s8  ;;  %s48_s10 = sadd.s32 1, %s1806_s23 }
  0x14   : > { %s2801_s6 = smov (%p35_p0, %s34_s6), 0  ;;  %s2803_s7 = smov (!%p35_p0, %s37_s7), %s1822_s27 }
  0x15   : > { %2769 = sst [smem:[#allocation18_spill]] %s2801_s6  ;;  %p55_p1 = scmp.ne.s32.totalorder %s1806_s23, %s1802_s22 }
  0x16   : > { %p56_p2 = scmp.eq.s32.totalorder %s1826_s28, 0  ;;  %p39_p3 = scmp.ge.s32.totalorder %s2803_s7, 2 }
  0x17   : > { %p61_p4 = scmp.ne.s32.totalorder %s1802_s22, %s1798_s21  ;;  %p62_p6 = scmp.eq.s32.totalorder %s1926_s29, 0 }
  0x18   : > { %p1944_p5 = por %p56_p2, %p55_p1  ;;  %s2805_s7 = smov (%p39_p3, %s2803_s7), 0 }
  0x19   : > { %2771 = sst [smem:[#allocation19_spill]] %s2805_s7  ;;  %p1951_p7 = por %p62_p6, %p61_p4 }
  0x1a   : > { %p149_p8 = scmp.eq.s32.totalorder %s1926_s29, 3  ;;  %s1345_s13 = sshll.u32 %s2805_s7, 1 }
  0x1b   : > { %p1959_p9 = scmp.eq.s32.totalorder %s2751_s30, 3  ;;  %s44_s15 = sadd.s32 %s1345_s13, %s2801_s6 }
  0x1c   : > { %p1966_p10 = por %p149_p8, %p55_p1  ;;  %s45_s17 = ssub.s32 %s1933_s9, %s44_s15 }
  0x1d   : > { %p1973_p11 = por %p1959_p9, %p61_p4  ;;  %p46_p12 = scmp.eq.s32.totalorder %s45_s17, 0 }
  0x1e   : > { %s2774_s16 = scalar_select %p1966_p10, 1, 0 }
  0x1f   : > { %s2775_s8 = scalar_select %p1973_p11, 1, 0 }
  0x20   : > { %s161_s30 = ssub.s32 %s1822_s27, %s2805_s7  ;;  %s164_s26 = sadd.s32 1, %s1794_s20 }
  0x21   : > { %p162_p13 = scmp.eq.s32.totalorder %s161_s30, 0  ;;  %p174_p0 = scmp.ne.s32.totalorder %s1794_s20, %s1790_s19 }
  0x22   : > { %s1981_s21 = scalar_select %p46_p12, %s1806_s23, %s48_s10  }
  0x23   : > { %s1984_s13 = scalar_select %p162_p13, %s1794_s20, %s164_s26  }
  0x24   : > { %2776 = sst [smem:[#allocation20_spill]] %s1981_s21  ;;  %p180_p1 = scmp.ne.s32.totalorder %s1790_s19, %s1786_s18 }
  0x25   : > { %2777 = sst [smem:[#allocation21_spill]] %s1984_s13  ;;  %p1506_p2 = scmp.lt.s32.totalorder %s1826_s28, 4 }
  0x26   : > { %p1993_p3 = por %p174_p0, %p149_p8  ;;  %p1999_p4 = por %p180_p1, %p1959_p9 }
  0x27   : > { %s227_s30 = sand.u32 1, %s1806_s23   ;;  %s1356_s7 = sshll.u32 %s1933_s9, 6 }
  0x28   : > { %s2778_s15 = scalar_select %p1993_p3, 1, 0 }
  0x29   : > { %s2779_s17 = scalar_select %p1999_p4, 1, 0 }
  0x2a   : > { %s1354_s6 = sshll.u32 %s227_s30, 6  ;;  %s2780_s0 = sld [smem:[#allocation22_spill]] }
  0x2b   : > { %s231_s18 = scalar_lea.vmem [#allocation2], %s1354_s6  ;;  %p2012_p6 = pnand %p1506_p2, %p1944_p5 }
  0x2c   : > { %s239_s21 = sshll.u32 %s231_s18, 4  ;;  %s2019_s9 = scalar_lea.sflag [#allocation3], %s227_s30  ;;  %s2016_s21 = int_to_ptr.vmem [resolvable:$true] %s239_s21 }
  0x2d   : > { %p1616_p12 = pneg %p2012_p6 }
  0x30   : > { %s2008_s26 = scalar_lea.hbm %s2780_s0, %s1356_s7  ;;  %s1619_s11 = scalar_lea.hbm %s2780_s0, 4096 }
  0x31   : > { %s1614_s27 = scalar_lea.hbm %s2008_s26, 1024  ;;  %p1620_p5 = scmp.lt.u32.totalorder %s2008_s26, %s2780_s0 }
  0x32   : > { %p1615_p9 = scmp.ne.s32.totalorder %s2008_s26, %s1614_s27  ;;  %p1621_p1 = scmp.lt.u32.totalorder %s1619_s11, %s1614_s27 }
  0x33   : > { %p1623_p8 = scmp.lt.u32.totalorder %s1614_s27, %s2008_s26 }
  0x34   : > { %p1617_p13 = pnand %p1616_p12, %p1615_p9  ;;  %p1622_p2 = por %p1621_p1, %p1620_p5 }
  0x36   : > { %p1618_p0 = pneg %p1617_p13  ;;  %p1624_p4 = por %p1623_p8, %p1622_p2 }
  0x38   : > { %p1625_p11 = pnand %p1624_p4, %p1618_p0 }
  0x3a   : > { %1628 = shalt.err (!%p1625_p11)
}
  0x3b   : > { %s1629_s30 = scalar_lea.vmem %s2016_s21, 1024  ;;  %s1828_s6 = smov [#allocation2]  }
  0x3c   : > { %p1630_p9 = scmp.ne.s32.totalorder %s2016_s21, %s1629_s30  ;;  %s1634_s7 = sshll.u32 %s1828_s6, 4  ;;  %s1635_s7 = int_to_ptr.vmem [resolvable:$false] %s1634_s7 }
  0x3d   : > { %s1636_s10 = scalar_lea.vmem %s1635_s7, 2048  ;;  %p1637_p10 = scmp.lt.s32.totalorder %s2016_s21, %s1635_s7 }
  0x3e   : > { %p1632_p13 = pnand %p1630_p9, %p1616_p12  ;;  %p1638_p5 = scmp.lt.s32.totalorder %s1636_s10, %s1629_s30 }
  0x40   : > { %p1633_p3 = pneg %p1632_p13  ;;  %p1639_p1 = por %p1638_p5, %p1637_p10 }
  0x42   : > { %p1640_p8 = pnand %p1639_p1, %p1633_p3 }
  0x44   : > { %1643 = shalt.err (!%p1640_p8)
}
  0x45   : > { %s1829_s27 = smov 256   ;;  %s1830_s11 = smov 64  }
  0x46   : > { %s1831_s18 = smov 4   ;;  %p273_p11 = scmp.lt.s32.totalorder %s1826_s28, 5 }
  0x47   : > { %1495 = dma.hbm_to_vmem [thread:$0]  (!%p2012_p6), %s2008_s26, 1024, %s2016_s21, %s2019_s9, %s1829_s27, %s1830_s11, %s1831_s18  }
  0x48   : > { %p2782_p4 = scmp.ge.s32.totalorder %s1826_s28, 1 }
  0x4a   : > { %p274_p12 = pnand %p2782_p4, %p273_p11 }
  0x4b   : > { %s2051_s30 = sand.u32 (!%p274_p12), 1, %s1802_s22  }
  0x4c   : > { %277 = sbr.rel (%p274_p12) target bundleno = 899 (0x383), region = 32  ;;  %s1358_s6 = sshll.u32 (!%p274_p12), %s2051_s30, 6 }
  0x4d   : > { %s280_s7 = scalar_lea.sflag (!%p274_p12), [#allocation3], %s2051_s30  ;;  %s2055_s10 = scalar_lea.vmem (!%p274_p12), [#allocation2], %s1358_s6 }
  0x53   : > { %1773 = dma.done.wait (%p1951_p7), %s280_s7, 1024  }
  0x54   : > { %1775 = vsyncadd (%p1951_p7), %s280_s7, 4294966272  ;;  %s1359_s21 = sshll.u32 %s2051_s30, 7  ;;  %s324_s26 = sand.u32 1, %s1790_s19  }
  0x55   : > { %s1360_s14 = sshll.u32 %s324_s26, 7  ;;  %s1361_s9 = sshll.u32 %s1814_s25, 1 }
  0x56   : > { %s2065_s27 = sadd.s32 %s1810_s24, %s1361_s9  ;;  %s2078_s13 = scalar_lea.vmem [#allocation5], %s1359_s21 }
  0x57   : > { %s1362_s11 = sshll.u32 %s2065_s27, 4  ;;  %s2080_s20 = scalar_lea.vmem [#allocation6], %s1360_s14 }
  0x58   : > { %p338_p10 = scmp.lt.s32.totalorder %s1362_s11, 63  ;;  %s2082_s9 = scalar_lea.vmem [#allocation8], %s324_s26 }
  0x59   : > { %p1367_p7 = scmp.ne.s32.totalorder %s1810_s24, 0 }
  0x5a   : > { %s2807_s11 = smov (!%p338_p10, %s1362_s11), 63  ;;  %v1832_v0 = vmov (!%p1367_p7), 0.0  }
  0x5b   : > { %s1363_s18 = sshll.u32 %s2807_s11, 3  ;;  %362 = sbr.rel (%p1367_p7) target bundleno = 100 (0x64), region = 40  ;;  %363 = vst [vmem:[%s2080_s20] sm:$0xff] (!%p1367_p7), %v1832_v0  ;;  %364 = vst [vmem:[%s2080_s20 + $0x8] sm:$0xff] (!%p1367_p7), %v1832_v0 }
  0x5c   : > { %s2071_s12 = scalar_lea.vmem %s2746_s1, %s1363_s18  ;;  %s2076_s22 = scalar_lea.vmem %s2747_s2, %s1363_s18  ;;  %365 = vst [vmem:[%s2080_s20 + $0x10] sm:$0xff] (!%p1367_p7), %v1832_v0  ;;  %366 = vst [vmem:[%s2080_s20 + $0x18] sm:$0xff] (!%p1367_p7), %v1832_v0 }
  0x5d   : > { %367 = vst [vmem:[%s2080_s20 + $0x20] sm:$0xff] (!%p1367_p7), %v1832_v0  ;;  %368 = vst [vmem:[%s2080_s20 + $0x28] sm:$0xff] (!%p1367_p7), %v1832_v0 }
  0x5e   : > { %369 = vst [vmem:[%s2080_s20 + $0x30] sm:$0xff] (!%p1367_p7), %v1832_v0  ;;  %370 = vst [vmem:[%s2080_s20 + $0x38] sm:$0xff] (!%p1367_p7), %v1832_v0 }
  0x5f   : > { %371 = vst [vmem:[%s2080_s20 + $0x40] sm:$0xff] (!%p1367_p7), %v1832_v0  ;;  %372 = vst [vmem:[%s2080_s20 + $0x48] sm:$0xff] (!%p1367_p7), %v1832_v0 }
  0x60   : > { %373 = vst [vmem:[%s2080_s20 + $0x50] sm:$0xff] (!%p1367_p7), %v1832_v0  ;;  %374 = vst [vmem:[%s2080_s20 + $0x58] sm:$0xff] (!%p1367_p7), %v1832_v0 }
  0x61   : > { %375 = vst [vmem:[%s2080_s20 + $0x60] sm:$0xff] (!%p1367_p7), %v1832_v0  ;;  %376 = vst [vmem:[%s2080_s20 + $0x68] sm:$0xff] (!%p1367_p7), %v1832_v0 }
  0x62   : > { %377 = vst [vmem:[%s2080_s20 + $0x70] sm:$0xff] %v1832_v0  ;;  %378 = vst [vmem:[%s2080_s20 + $0x78] sm:$0xff] %v1832_v0 }
  0x63   : > { %379 = vst [vmem:[%s2082_s9] sm:$0x1] %v1832_v0 }
  0x64 PF: > { %v380_v1 = vld [vmem:[%s2071_s12] sm:$0xff]  ;;  %v382_v2 = vld [vmem:[%s2071_s12 + $0x10] sm:$0xff]  ;;  %v2105_v3 = vld [vmem:[%s2071_s12 + $0x8] sm:$0xff]  ;;  %v1833_v5 = vmov 0   ;;  %v396_v26 = vlaneseq  ;;  %s1418_s0 = sshll.u32 %s2065_s27, 11  ;;  %s1144_s21 = sshll.u32 %s2078_s13, 4  ;;  %s2573_s21 = int_to_ptr.vmem [resolvable:$true] %s1144_s21 }
  0x65   : > { %510 = vmax.xlane.f32.xlu0 %v380_v1  ;;  %514 = vmax.xlane.f32.xlu1 %v382_v2  ;;  %v2108_v4 = vld [vmem:[%s2071_s12 + $0x18] sm:$0xff]  ;;  %v2113_v6 = vld [vmem:[%s2071_s12 + $0x20] sm:$0xff]  ;;  %v2116_v7 = vld [vmem:[%s2071_s12 + $0x28] sm:$0xff]  ;;  %s2570_s24 = scalar_lea.hbm %s2748_s3, %s1418_s0  ;;  %s1644_s26 = scalar_lea.vmem %s2573_s21, 2048 }
  0x66   : > { %1605 = vset.pattern.permute.xlu1 %v1833_v5  ;;  %1604 = vset.pattern.permute.xlu0 %v1833_v5  ;;  %v2119_v8 = vld [vmem:[%s2071_s12 + $0x30] sm:$0xff]  ;;  %v2122_v9 = vld [vmem:[%s2071_s12 + $0x38] sm:$0xff]  ;;  %v2129_v10 = vld [vmem:[%s2071_s12 + $0x40] sm:$0xff]  ;;  %v2168_v27 = vand.u32 127, %v396_v26  ;;  %p1645_p3 = scmp.ne.s32.totalorder %s2573_s21, %s1644_s26  ;;  %p2783_p6 = scmp.ne.s32.totalorder %s2774_s16, 0 }
  0x67   : > { %v2132_v11 = vld [vmem:[%s2071_s12 + $0x48] sm:$0xff]  ;;  %v2137_v12 = vld [vmem:[%s2071_s12 + $0x50] sm:$0xff]  ;;  %v2140_v13 = vld [vmem:[%s2071_s12 + $0x58] sm:$0xff]  ;;  %s1835_s14 = smov [#allocation5]  }
  0x68   : > { %v2145_v14 = vld [vmem:[%s2071_s12 + $0x60] sm:$0xff]  ;;  %v2148_v15 = vld [vmem:[%s2071_s12 + $0x68] sm:$0xff]  ;;  %v2153_v16 = vld [vmem:[%s2071_s12 + $0x70] sm:$0xff]  ;;  %p1646_p0 = pnand %p1645_p3, %p2783_p6  ;;  %s1648_s11 = sshll.u32 %s1835_s14, 4  ;;  %s1649_s11 = int_to_ptr.vmem [resolvable:$false] %s1648_s11 }
  0x69   : > { %512 = vmax.xlane.f32.xlu0 %v2105_v3  ;;  %516 = vmax.xlane.f32.xlu1 %v2108_v4  ;;  %v2156_v17 = vld [vmem:[%s2071_s12 + $0x78] sm:$0xff]  ;;  %v399_v18 = vld [vmem:[%s2076_s22 + $0x8] sm:$0xff]  ;;  %v400_v19 = vld [vmem:[%s2076_s22 + $0x10] sm:$0xff]  ;;  %s1650_s27 = scalar_lea.vmem %s1649_s11, 4096  ;;  %p1651_p9 = scmp.lt.s32.totalorder %s2573_s21, %s1649_s11 }
  0x6a   : > { %v398_v20 = vld [vmem:[%s2076_s22] sm:$0xff]  ;;  %v401_v21 = vld [vmem:[%s2076_s22 + $0x18] sm:$0xff]  ;;  %v404_v23 = vld [vmem:[%s2076_s22 + $0x30] sm:$0xff]  ;;  %p1647_p2 = pneg %p1646_p0  ;;  %p1652_p13 = scmp.lt.s32.totalorder %s1650_s27, %s1644_s26 }
  0x6b   : > { %v402_v22 = vld [vmem:[%s2076_s22 + $0x20] sm:$0xff]  ;;  %v403_v24 = vld [vmem:[%s2076_s22 + $0x28] sm:$0xff]  ;;  %v405_v25 = vld [vmem:[%s2076_s22 + $0x38] sm:$0xff] }
  0x6c   : > { %v409_v26 = vld [vmem:[%s2076_s22 + $0x58] sm:$0xff]  ;;  %p1653_p5 = por %p1652_p13, %p1651_p9 }
  0x6d   : > { %518 = vmax.xlane.f32.xlu0 %v2113_v6  ;;  %520 = vmax.xlane.f32.xlu1 %v2116_v7 }
  0x6e   : > { %p1654_p1 = pnand %p1653_p5, %p1647_p2 }
  0x71   : > { %522 = vmax.xlane.f32.xlu0 %v2119_v8  ;;  %524 = vmax.xlane.f32.xlu1 %v2122_v9 }
  0x75   : > { %526 = vmax.xlane.f32.xlu0 %v2129_v10  ;;  %528 = vmax.xlane.f32.xlu1 %v2132_v11 }
  0x79   : > { %530 = vmax.xlane.f32.xlu0 %v2137_v12  ;;  %532 = vmax.xlane.f32.xlu1 %v2140_v13 }
  0x7d   : > { %534 = vmax.xlane.f32.xlu0 %v2145_v14  ;;  %536 = vmax.xlane.f32.xlu1 %v2148_v15 }
  0x81   : > { %538 = vmax.xlane.f32.xlu0 %v2153_v16  ;;  %540 = vmax.xlane.f32.xlu1 %v2156_v17 }
  0x92   : > { %418 = vperm.xlu1 %1605, %v399_v18  }
  0x96   : > { %421 = vperm.xlu1 %1605, %v400_v19  }
  0x97   : > { %415 = vperm.xlu0 %1604, %v398_v20  }
  0x9a   : > { %424 = vperm.xlu1 %1605, %v401_v21  }
  0x9b   : > { %427 = vperm.xlu0 %1604, %v402_v22  }
  0x9e   : > { %433 = vperm.xlu1 %1605, %v404_v23  }
  0x9f   : > { %430 = vperm.xlu0 %1604, %v403_v24  }
  0xa2   : > { %436 = vperm.xlu1 %1605, %v405_v25  }
  0xf2   : > { %v511_v28 = vpop.xlane.xlu0 %510  ;;  %v515_v29 = vpop.xlane.xlu1 %514 }
  0xf3   : > { %vm542_vm0 = vcmp.eq.f32.partialorder %v380_v1, %v511_v28  ;;  %vm544_vm1 = vcmp.eq.f32.partialorder %v382_v2, %v515_v29  ;;  %v406_v28 = vld [vmem:[%s2076_s22 + $0x40] sm:$0xff] }
  0xf4   : > { %v2171_v30 = vsel %vm542_vm0, %v2168_v27, 128  ;;  %v2174_v31 = vsel %vm544_vm1, %v2168_v27, 128  ;;  %v410_v29 = vld [vmem:[%s2076_s22 + $0x60] sm:$0xff] }
  0xf5   : > { %v575_v32 = vshra.s32 %v2171_v30, 16  ;;  %v603_v33 = vshra.s32 %v2174_v31, 16 }
  0xf6   : > { %v513_v34 = vpop.xlane.xlu0 %512  ;;  %v517_v35 = vpop.xlane.xlu1 %516 }
  0xf7   : > { %vm543_vm2 = vcmp.eq.f32.partialorder %v2105_v3, %v513_v34  ;;  %v2179_v36 = vcvt.s32.f32 %v575_v32  ;;  %vm545_vm3 = vcmp.eq.f32.partialorder %v2108_v4, %v517_v35  ;;  %v2189_v39 = vcvt.s32.f32 %v603_v33  ;;  %v407_v32 = vld [vmem:[%s2076_s22 + $0x48] sm:$0xff] }
  0xf8   : > { %v2183_v37 = vsel %vm543_vm2, %v2168_v27, 128  ;;  %v2186_v38 = vsel %vm545_vm3, %v2168_v27, 128 }
  0xf9   : > { %578 = vmin.xlane.f32.xlu0 %v2179_v36  ;;  %v589_v40 = vshra.s32 %v2183_v37, 16  ;;  %v617_v41 = vshra.s32 %v2186_v38, 16 }
  0xfa   : > { %v519_v42 = vpop.xlane.xlu0 %518  ;;  %v521_v43 = vpop.xlane.xlu1 %520 }
  0xfb   : > { %vm546_vm4 = vcmp.eq.f32.partialorder %v2113_v6, %v519_v42  ;;  %v2194_v44 = vcvt.s32.f32 %v589_v40  ;;  %vm547_vm5 = vcmp.eq.f32.partialorder %v2116_v7, %v521_v43  ;;  %v2205_v47 = vcvt.s32.f32 %v617_v41 }
  0xfc   : > { %v2198_v45 = vsel %vm546_vm4, %v2168_v27, 128  ;;  %v2201_v46 = vsel %vm547_vm5, %v2168_v27, 128 }
  0xfd   : > { %606 = vmin.xlane.f32.xlu0 %v2189_v39  ;;  %592 = vmin.xlane.f32.xlu1 %v2194_v44  ;;  %v631_v48 = vshra.s32 %v2198_v45, 16  ;;  %v645_v49 = vshra.s32 %v2201_v46, 16 }
  0xfe   : > { %v523_v50 = vpop.xlane.xlu0 %522  ;;  %v525_v51 = vpop.xlane.xlu1 %524 }
  0xff   : > { %vm548_vm6 = vcmp.eq.f32.partialorder %v2119_v8, %v523_v50  ;;  %v2210_v52 = vcvt.s32.f32 %v631_v48  ;;  %vm549_vm7 = vcmp.eq.f32.partialorder %v2122_v9, %v525_v51  ;;  %v2221_v55 = vcvt.s32.f32 %v645_v49 }
 0x100   : > { %v2214_v53 = vsel %vm548_vm6, %v2168_v27, 128  ;;  %v2217_v54 = vsel %vm549_vm7, %v2168_v27, 128  ;;  %v574_v50 = vand.u32 65535, %v2171_v30  ;;  %v630_v30 = vand.u32 65535, %v2198_v45 }
 0x101   : > { %620 = vmin.xlane.f32.xlu1 %v2205_v47  ;;  %634 = vmin.xlane.f32.xlu0 %v2210_v52  ;;  %v659_v56 = vshra.s32 %v2214_v53, 16  ;;  %v673_v57 = vshra.s32 %v2217_v54, 16 }
 0x102   : > { %v527_v58 = vpop.xlane.xlu0 %526  ;;  %v529_v59 = vpop.xlane.xlu1 %528 }
 0x103   : > { %vm550_vm8 = vcmp.eq.f32.partialorder %v2129_v10, %v527_v58  ;;  %v2226_v60 = vcvt.s32.f32 %v659_v56  ;;  %vm551_vm9 = vcmp.eq.f32.partialorder %v2132_v11, %v529_v59  ;;  %v2237_v63 = vcvt.s32.f32 %v673_v57 }
 0x104   : > { %v2230_v61 = vsel %vm550_vm8, %v2168_v27, 128  ;;  %v2233_v62 = vsel %vm551_vm9, %v2168_v27, 128  ;;  %v602_v56 = vand.u32 65535, %v2174_v31  ;;  %v588_v57 = vand.u32 65535, %v2183_v37 }
 0x105   : > { %648 = vmin.xlane.f32.xlu1 %v2221_v55  ;;  %662 = vmin.xlane.f32.xlu0 %v2226_v60  ;;  %v687_v0 = vshra.s32 %v2230_v61, 16  ;;  %v701_v1 = vshra.s32 %v2233_v62, 16 }
 0x106   : > { %v531_v2 = vpop.xlane.xlu0 %530  ;;  %v533_v3 = vpop.xlane.xlu1 %532  ;;  %v590_v31 = vcvt.s32.f32 %v588_v57  ;;  %v604_v37 = vcvt.s32.f32 %v602_v56 }
 0x107   : > { %vm552_vm10 = vcmp.eq.f32.partialorder %v2137_v12, %v531_v2  ;;  %v2242_v4 = vcvt.s32.f32 %v687_v0  ;;  %vm553_vm11 = vcmp.eq.f32.partialorder %v2140_v13, %v533_v3  ;;  %v2253_v7 = vcvt.s32.f32 %v701_v1 }
 0x108   : > { %v2246_v5 = vsel %vm552_vm10, %v2168_v27, 128  ;;  %v2249_v6 = vsel %vm553_vm11, %v2168_v27, 128  ;;  %v576_v0 = vcvt.s32.f32 %v574_v50  ;;  %v616_v2 = vand.u32 65535, %v2186_v38 }
 0x109   : > { %676 = vmin.xlane.f32.xlu1 %v2237_v63  ;;  %690 = vmin.xlane.f32.xlu0 %v2242_v4  ;;  %v715_v8 = vshra.s32 %v2246_v5, 16  ;;  %v729_v9 = vshra.s32 %v2249_v6, 16  ;;  %v644_v38 = vand.u32 65535, %v2201_v46  ;;  %v672_v46 = vand.u32 65535, %v2217_v54 }
 0x10a   : > { %v535_v10 = vpop.xlane.xlu0 %534  ;;  %v537_v11 = vpop.xlane.xlu1 %536 }
 0x10b   : > { %vm554_vm12 = vcmp.eq.f32.partialorder %v2145_v14, %v535_v10  ;;  %v2258_v12 = vcvt.s32.f32 %v715_v8  ;;  %vm555_vm13 = vcmp.eq.f32.partialorder %v2148_v15, %v537_v11  ;;  %v2269_v19 = vcvt.s32.f32 %v729_v9 }
 0x10c   : > { %v2262_v13 = vsel %vm554_vm12, %v2168_v27, 128  ;;  %v2265_v18 = vsel %vm555_vm13, %v2168_v27, 128  ;;  %v618_v11 = vcvt.s32.f32 %v616_v2 }
 0x10d   : > { %704 = vmin.xlane.f32.xlu1 %v2253_v7  ;;  %718 = vmin.xlane.f32.xlu0 %v2258_v12  ;;  %v743_v14 = vshra.s32 %v2262_v13, 16  ;;  %v757_v20 = vshra.s32 %v2265_v18, 16 }
 0x10e   : > { %v539_v15 = vpop.xlane.xlu0 %538  ;;  %v541_v33 = vpop.xlane.xlu1 %540 }
 0x10f   : > { %vm556_vm14 = vcmp.eq.f32.partialorder %v2153_v16, %v539_v15  ;;  %v2274_v21 = vcvt.s32.f32 %v743_v14  ;;  %v2281_v23 = vcvt.s32.f32 %v757_v20  ;;  %v408_v16 = vld [vmem:[%s2076_s22 + $0x50] sm:$0xff]  ;;  %vm557_vm15 = vcmp.eq.f32.partialorder %v2156_v17, %v541_v33 }
 0x110   : > { %v2277_v22 = vsel %vm556_vm14, %v2168_v27, 128  ;;  %v2295_v34 = vsel %vm557_vm15, %v2168_v27, 128  ;;  %v632_v14 = vcvt.s32.f32 %v630_v30  ;;  %v658_v20 = vand.u32 65535, %v2214_v53 }
 0x111   : > { %732 = vmin.xlane.f32.xlu1 %v2269_v19  ;;  %746 = vmin.xlane.f32.xlu0 %v2274_v21  ;;  %v771_v24 = vshra.s32 %v2277_v22, 16  ;;  %v785_v35 = vshra.s32 %v2295_v34, 16 }
 0x112   : > { %v2301_v41 = vpop.permute.xlu1 %418 }
 0x113   : > { %v2284_v25 = vcvt.s32.f32 %v771_v24  ;;  %v2298_v40 = vcvt.s32.f32 %v785_v35 }
 0x115   : > { %760 = vmin.xlane.f32.xlu1 %v2281_v23  ;;  %774 = vmin.xlane.f32.xlu0 %v2284_v25 }
 0x116   : > { %v2303_v42 = vpop.permute.xlu1 %421  ;;  %v2305_v43 = vpop.permute.xlu0 %415 }
 0x11a   : > { %v2307_v48 = vpop.permute.xlu1 %424  ;;  %v2309_v49 = vpop.permute.xlu0 %427 }
 0x11e   : > { %v2311_v17 = vpop.permute.xlu1 %433  ;;  %v2314_v51 = vpop.permute.xlu0 %430 }
 0x122   : > { %v2318_v58 = vpop.permute.xlu1 %436 }
 0x126   : > { %445 = vperm.xlu1 %1605, %v408_v16   ;;  %v646_v16 = vcvt.s32.f32 %v644_v38 }
 0x12a   : > { %448 = vperm.xlu1 %1605, %v409_v26   ;;  %v700_v26 = vand.u32 65535, %v2233_v62 }
 0x12b   : > { %439 = vperm.xlu0 %1604, %v406_v28   ;;  %v674_v28 = vcvt.s32.f32 %v672_v46  ;;  %v1606_v46 = vld [vmem:[%s2055_s10] sm:$0xff]  }
 0x12c   : > { %v702_v35 = vcvt.s32.f32 %v700_v26  ;;  %1452 = vmatprep.mubr.bf16.mxu0 %v1606_v46 }
 0x12e   : > { %451 = vperm.xlu1 %1605, %v410_v29   ;;  %v660_v29 = vcvt.s32.f32 %v658_v20  ;;  %v413_v20 = vld [vmem:[%s2076_s22 + $0x78] sm:$0xff] }
 0x12f   : > { %442 = vperm.xlu0 %1604, %v407_v32  }
 0x152   : > { %788 = vmin.xlane.f32.xlu1 %v2298_v40 }
 0x186   : > { %v2320_v59 = vpop.xlane.xlu0 %578 }
 0x187   : > { %vm580_vm0 = vcmp.eq.f32.partialorder %v2179_v36, %v2320_v59 }
 0x188   : > { %v581_v1 = vsel %vm580_vm0, %v576_v0, inf  ;;  %vm463_vm0 = vcmp.eq.s32.totalorder %v2168_v27, %v2301_v41 }
 0x189   : > { %582 = vmin.xlane.f32.xlu0 %v581_v1 }
 0x18a   : > { %v2326_v3 = vpop.xlane.xlu1 %592  ;;  %v2328_v8 = vpop.xlane.xlu0 %606 }
 0x18b   : > { %vm594_vm1 = vcmp.eq.f32.partialorder %v2194_v44, %v2326_v3  ;;  %vm608_vm2 = vcmp.eq.f32.partialorder %v2189_v39, %v2328_v8 }
 0x18c   : > { %v595_v9 = vsel %vm594_vm1, %v590_v31, inf  ;;  %v609_v36 = vsel %vm608_vm2, %v604_v37, inf  ;;  %vm464_vm1 = vcmp.eq.s32.totalorder %v2168_v27, %v2303_v42  ;;  %vm462_vm2 = vcmp.eq.s32.totalorder %v2168_v27, %v2305_v43 }
 0x18d   : > { %596 = vmin.xlane.f32.xlu1 %v595_v9  ;;  %610 = vmin.xlane.f32.xlu0 %v609_v36  ;;  %v412_v9 = vld [vmem:[%s2076_s22 + $0x70] sm:$0xff]  ;;  %v411_v36 = vld [vmem:[%s2076_s22 + $0x68] sm:$0xff] }
 0x18e   : > { %v2335_v10 = vpop.xlane.xlu1 %620  ;;  %v2337_v45 = vpop.xlane.xlu0 %634 }
 0x18f   : > { %vm622_vm3 = vcmp.eq.f32.partialorder %v2205_v47, %v2335_v10  ;;  %vm636_vm4 = vcmp.eq.f32.partialorder %v2210_v52, %v2337_v45  ;;  %v686_v52 = vand.u32 65535, %v2230_v61  ;;  %v728_v61 = vand.u32 65535, %v2249_v6 }
 0x190   : > { %v623_v44 = vsel %vm622_vm3, %v618_v11, inf  ;;  %v637_v39 = vsel %vm636_vm4, %v632_v14, inf  ;;  %v784_v11 = vand.u32 65535, %v2295_v34  ;;  %v585_v34 = vcvt.f32.s32 %v2320_v59 }
 0x191   : > { %624 = vmin.xlane.f32.xlu1 %v623_v44  ;;  %638 = vmin.xlane.f32.xlu0 %v637_v39  ;;  %v688_v50 = vcvt.s32.f32 %v686_v52  ;;  %v730_v0 = vcvt.s32.f32 %v728_v61  ;;  %vm465_vm3 = vcmp.eq.s32.totalorder %v2168_v27, %v2307_v48  ;;  %v1834_v59 = vmov 0.0  }
 0x192   : > { %v2345_v15 = vpop.xlane.xlu1 %648  ;;  %v2347_v24 = vpop.xlane.xlu0 %662  ;;  %v1370_v41 = vsel %vm464_vm1, 1.0, %v1834_v59  ;;  %v1368_v42 = vsel %vm462_vm2, 1.0, %v1834_v59  ;;  %vm466_vm4 = vcmp.eq.s32.totalorder %v2168_v27, %v2309_v49  ;;  %v1371_v43 = vsel %vm465_vm3, 1.0, %v1834_v59 }
 0x193   : > { %vm650_vm5 = vcmp.eq.f32.partialorder %v2221_v55, %v2345_v15  ;;  %vm664_vm6 = vcmp.eq.f32.partialorder %v2226_v60, %v2347_v24  ;;  %v714_v60 = vand.u32 65535, %v2246_v5  ;;  %v756_v5 = vand.u32 65535, %v2265_v18 }
 0x194   : > { %v651_v47 = vsel %vm650_vm5, %v646_v16, inf  ;;  %v665_v55 = vsel %vm664_vm6, %v660_v29, inf  ;;  %v1607_v16 = vld [vmem:[%s2055_s10 + $0x20] sm:$0xff]   ;;  %v613_v29 = vcvt.f32.s32 %v2328_v8  ;;  %vm468_vm5 = vcmp.eq.s32.totalorder %v2168_v27, %v2311_v17 }
 0x195   : > { %652 = vmin.xlane.f32.xlu1 %v651_v47  ;;  %v716_v1 = vcvt.s32.f32 %v714_v60  ;;  %v758_v30 = vcvt.s32.f32 %v756_v5  ;;  %1460 = vmatprep.mubr.bf16.mxu1 %v1607_v16  ;;  %vm467_vm6 = vcmp.eq.s32.totalorder %v2168_v27, %v2314_v51  ;;  %v627_v8 = vcvt.f32.s32 %v2335_v10 }
 0x196   : > { %v2355_v53 = vpop.xlane.xlu1 %676  ;;  %v2357_v54 = vpop.xlane.xlu0 %690  ;;  %v641_v60 = vcvt.f32.s32 %v2337_v45  ;;  %v614_v49 = vshll.u32 %v613_v29, 16  ;;  %v669_v5 = vcvt.f32.s32 %v2347_v24  ;;  %v2446_v10 = vsel %vm468_vm5, 1.0, %v1834_v59 }
 0x197   : > { %vm678_vm7 = vcmp.eq.f32.partialorder %v2237_v63, %v2355_v53  ;;  %vm692_vm8 = vcmp.eq.f32.partialorder %v2242_v4, %v2357_v54  ;;  %v742_v4 = vand.u32 65535, %v2262_v13  ;;  %v628_v24 = vshll.u32 %v627_v8, 16 }
 0x198   : > { %v679_v32 = vsel %vm678_vm7, %v674_v28, inf  ;;  %v693_v56 = vsel %vm692_vm8, %v688_v50, inf  ;;  %v586_v28 = vshll.u32 %v585_v34, 16  ;;  %vm469_vm7 = vcmp.eq.s32.totalorder %v2168_v27, %v2318_v58 }
 0x199   : > { %680 = vmin.xlane.f32.xlu0 %v679_v32  ;;  %666 = vmin.xlane.f32.xlu1 %v665_v55  ;;  %v744_v31 = vcvt.s32.f32 %v742_v4  ;;  %v1369_v55 = vsel %vm463_vm0, 1.0, %v1834_v59  ;;  %v655_v4 = vcvt.f32.s32 %v2345_v15  ;;  %v1373_v15 = vsel %vm467_vm6, 1.0, %v1834_v59 }
 0x19a   : > { %v2365_v62 = vpop.xlane.xlu1 %704  ;;  %v2367_v33 = vpop.xlane.xlu0 %718 }
 0x19b   : > { %vm706_vm9 = vcmp.eq.f32.partialorder %v2253_v7, %v2365_v62  ;;  %vm720_vm10 = vcmp.eq.f32.partialorder %v2258_v12, %v2367_v33  ;;  %v770_v12 = vand.u32 65535, %v2277_v22  ;;  %v656_v58 = vshll.u32 %v655_v4, 16 }
 0x19c   : > { %v707_v63 = vsel %vm706_vm9, %v702_v35, inf  ;;  %v721_v2 = vsel %vm720_vm10, %v716_v1, inf  ;;  %v725_v46 = vcvt.f32.s32 %v2367_v33 }
 0x19d   : > { %708 = vmin.xlane.f32.xlu0 %v707_v63  ;;  %694 = vmin.xlane.f32.xlu1 %v693_v56  ;;  %v1372_v56 = vsel %vm466_vm4, 1.0, %v1834_v59 }
 0x19e   : > { %v2375_v6 = vpop.xlane.xlu1 %732  ;;  %v2377_v57 = vpop.xlane.xlu0 %746 }
 0x19f   : > { %vm734_vm11 = vcmp.eq.f32.partialorder %v2269_v19, %v2375_v6  ;;  %vm748_vm12 = vcmp.eq.f32.partialorder %v2274_v21, %v2377_v57  ;;  %v772_v21 = vcvt.s32.f32 %v770_v12  ;;  %v642_v12 = vshll.u32 %v641_v60, 16 }
 0x1a0   : > { %v735_v7 = vsel %vm734_vm11, %v730_v0, inf  ;;  %v749_v37 = vsel %vm748_vm12, %v744_v31, inf }
 0x1a1   : > { %736 = vmin.xlane.f32.xlu1 %v735_v7  ;;  %722 = vmin.xlane.f32.xlu0 %v721_v2  ;;  %v2452_v2 = vsel %vm469_vm7, 1.0, %v1834_v59 }
 0x1a2   : > { %v2384_v13 = vpop.xlane.xlu1 %760  ;;  %v2386_v18 = vpop.xlane.xlu0 %774 }
 0x1a3   : > { %vm762_vm13 = vcmp.eq.f32.partialorder %v2281_v23, %v2384_v13  ;;  %vm776_vm14 = vcmp.eq.f32.partialorder %v2284_v25, %v2386_v18  ;;  %v786_v25 = vcvt.s32.f32 %v784_v11 }
 0x1a4   : > { %v763_v19 = vsel %vm762_vm13, %v758_v30, inf  ;;  %v777_v22 = vsel %vm776_vm14, %v772_v21, inf }
 0x1a5   : > { %764 = vmin.xlane.f32.xlu0 %v763_v19  ;;  %750 = vmin.xlane.f32.xlu1 %v749_v37  ;;  %v670_v37 = vshll.u32 %v669_v5, 16 }
 0x1a6   : > { %v2394_v38 = vpop.permute.xlu1 %445 }
 0x1a7   : > { %vm472_vm2 = vcmp.eq.s32.totalorder %v2168_v27, %v2394_v38 }
 0x1a9   : > { %778 = vmin.xlane.f32.xlu0 %v777_v22 }
 0x1aa   : > { %v2396_v23 = vpop.permute.xlu1 %448  ;;  %v2408_v47 = vpop.permute.xlu0 %439 }
 0x1ab   : > { %vm470_vm14 = vcmp.eq.s32.totalorder %v2168_v27, %v2408_v47  ;;  %vm473_vm3 = vcmp.eq.s32.totalorder %v2168_v27, %v2396_v23 }
 0x1ae   : > { %v2399_v14 = vpop.permute.xlu1 %451  ;;  %v2410_v52 = vpop.permute.xlu0 %442 }
 0x1af   : > { %vm471_vm1 = vcmp.eq.s32.totalorder %v2168_v27, %v2410_v52  ;;  %v1379_v52 = vsel %vm473_vm3, 1.0, %v1834_v59  ;;  %vm474_vm6 = vcmp.eq.s32.totalorder %v2168_v27, %v2399_v14 }
 0x1b0   : > { %v1377_v47 = vsel %vm471_vm1, 1.0, %v1834_v59 }
 0x1b6   : > { %457 = vperm.xlu1 %1605, %v412_v9  }
 0x1bf   : > { %454 = vperm.xlu0 %1604, %v411_v36  }
 0x1df   : > { %v2401_v44 = vpop.xlane.xlu1 %788 }
 0x1e0   : > { %vm790_vm15 = vcmp.eq.f32.partialorder %v2298_v40, %v2401_v44  ;;  %v599_v40 = vcvt.f32.s32 %v2326_v3 }
 0x1e1   : > { %v791_v39 = vsel %vm790_vm15, %v786_v25, inf  ;;  %v683_v25 = vcvt.f32.s32 %v2355_v53 }
 0x1e2   : > { %792 = vmin.xlane.f32.xlu1 %v791_v39  ;;  %v600_v3 = vshll.u32 %v599_v40, 16  ;;  %v697_v39 = vcvt.f32.s32 %v2357_v54 }
 0x1f3   : > { %460 = vperm.xlu1 %1605, %v413_v20   ;;  %v711_v20 = vcvt.f32.s32 %v2365_v62 }
 0x216   : > { %v583_v26 = vpop.xlane.xlu0 %582 }
 0x217   : > { %v584_v32 = vcvt.f32.s32 %v583_v26  ;;  %v739_v26 = vcvt.f32.s32 %v2375_v6 }
 0x219   : > { %v587_v48 = vadd.s32 %v586_v28, %v584_v32 }
 0x21a   : > { %v597_v61 = vpop.xlane.xlu1 %596  ;;  %v611_v35 = vpop.xlane.xlu0 %610 }
 0x21b   : > { %vm798_vm8 = vcmp.eq.s32.totalorder %v2168_v27, %v587_v48  ;;  %v598_v50 = vcvt.f32.s32 %v597_v61  ;;  %v612_v63 = vcvt.f32.s32 %v611_v35  ;;  %v753_v48 = vcvt.f32.s32 %v2377_v57 }
 0x21c   : > { %v1384_v0 = vsel %vm798_vm8, 1.0, %v1834_v59  ;;  %v726_v61 = vshll.u32 %v725_v46, 16  ;;  %v740_v35 = vshll.u32 %v739_v26, 16 }
 0x21d   : > { %v846_v45 = vmul.f32 %v1384_v0, %v1368_v42  ;;  %v601_v1 = vadd.s32 %v600_v3, %v598_v50  ;;  %v615_v7 = vadd.s32 %v614_v49, %v612_v63  ;;  %v712_v42 = vshll.u32 %v711_v20, 16 }
 0x21e   : > { %v625_v30 = vpop.xlane.xlu1 %624  ;;  %v639_v17 = vpop.xlane.xlu0 %638  ;;  %v2479_v5 = vshll.u32 %v753_v48, 16  ;;  %v767_v0 = vcvt.f32.s32 %v2384_v13 }
 0x21f   : > { %862 = vst [vmem:[%s2078_s13] sm:$0xff] %v846_v45  ;;  %vm799_vm9 = vcmp.eq.s32.totalorder %v2168_v27, %v601_v1  ;;  %vm800_vm10 = vcmp.eq.s32.totalorder %v2168_v27, %v615_v7  ;;  %v626_v31 = vcvt.f32.s32 %v625_v30  ;;  %v640_v19 = vcvt.f32.s32 %v639_v17 }
 0x220   : > { %v1385_v21 = vsel %vm799_vm9, 1.0, %v1834_v59  ;;  %v1386_v51 = vsel %vm800_vm10, 1.0, %v1834_v59 }
 0x221   : > { %v847_v22 = vmul.f32 %v1385_v21, %v1369_v55  ;;  %v848_v9 = vmul.f32 %v1386_v51, %v1370_v41  ;;  %v629_v36 = vadd.s32 %v628_v24, %v626_v31  ;;  %v643_v11 = vadd.s32 %v642_v12, %v640_v19 }
 0x222   : > { %v653_v16 = vpop.xlane.xlu1 %652  ;;  %v684_v55 = vshll.u32 %v683_v25, 16  ;;  %v698_v41 = vshll.u32 %v697_v39, 16  ;;  %v1376_v21 = vsel %vm470_vm14, 1.0, %v1834_v59 }
 0x223   : > { %863 = vst [vmem:[%s2078_s13 + $0x8] sm:$0xff] %v847_v22  ;;  %v879_v34 = vadd.f32 %v847_v22, %v846_v45  ;;  %864 = vst [vmem:[%s2078_s13 + $0x10] sm:$0xff] %v848_v9  ;;  %vm801_vm11 = vcmp.eq.s32.totalorder %v2168_v27, %v629_v36  ;;  %vm802_vm12 = vcmp.eq.s32.totalorder %v2168_v27, %v643_v11  ;;  %v654_v40 = vcvt.f32.s32 %v653_v16 }
 0x224   : > { %v1387_v53 = vsel %vm801_vm11, 1.0, %v1834_v59  ;;  %v1388_v54 = vsel %vm802_vm12, 1.0, %v1834_v59  ;;  %v934_v62 = vpack.c.bf16 %v847_v22, %v846_v45  ;;  %v781_v45 = vcvt.f32.s32 %v2386_v18 }
 0x225   : > { %v880_v28 = vadd.f32 %v879_v34, %v848_v9  ;;  %v849_v33 = vmul.f32 %v1387_v53, %v1371_v43  ;;  %v850_v29 = vmul.f32 %v1388_v54, %v1372_v56  ;;  %v657_v32 = vadd.s32 %v656_v58, %v654_v40 }
 0x226   : > { %1436 = vmatprep.subr.bf16.mxu0 %v934_v62  ;;  %1468 = vmatprep.subr.bf16.mxu1 %v934_v62  ;;  %v667_v3 = vpop.xlane.xlu1 %666  ;;  %v681_v6 = vpop.xlane.xlu0 %680  ;;  %v1378_v34 = vsel %vm472_vm2, 1.0, %v1834_v59 }
 0x227   : > { %865 = vst [vmem:[%s2078_s13 + $0x18] sm:$0xff] %v849_v33  ;;  %v881_v8 = vadd.f32 %v880_v28, %v849_v33  ;;  %866 = vst [vmem:[%s2078_s13 + $0x20] sm:$0xff] %v850_v29  ;;  %vm803_vm13 = vcmp.eq.s32.totalorder %v2168_v27, %v657_v32  ;;  %v668_v60 = vcvt.f32.s32 %v667_v3  ;;  %1437 = vmatpush3.bf16.msra.mxu0 %v934_v62  ;;  %1476 = vmatpush3.bf16.msra.mxu1 %v934_v62 }
 0x228   : > { %v682_v43 = vcvt.f32.s32 %v681_v6  ;;  %v1389_v49 = vsel %vm803_vm13, 1.0, %v1834_v59  ;;  %v935_v50 = vpack.c.bf16 %v849_v33, %v848_v9  ;;  %v768_v6 = vshll.u32 %v767_v0, 16 }
 0x229   : > { %v882_v57 = vadd.f32 %v881_v8, %v850_v29  ;;  %v851_v63 = vmul.f32 %v1389_v49, %v1373_v15  ;;  %v671_v56 = vadd.s32 %v670_v37, %v668_v60  ;;  %v782_v8 = vshll.u32 %v781_v45, 16 }
 0x22a   : > { %v685_v4 = vadd.s32 %v684_v55, %v682_v43  ;;  %1438 = vmatprep.subr.bf16.mxu0 %v935_v50  ;;  %1469 = vmatprep.subr.bf16.mxu1 %v935_v50  ;;  %v695_v1 = vpop.xlane.xlu1 %694  ;;  %v709_v7 = vpop.xlane.xlu0 %708  ;;  %v1380_v43 = vsel %vm474_vm6, 1.0, %v1834_v59 }
 0x22b   : > { %867 = vst [vmem:[%s2078_s13 + $0x28] sm:$0xff] %v851_v63  ;;  %v883_v24 = vadd.f32 %v882_v57, %v851_v63  ;;  %vm804_vm15 = vcmp.eq.s32.totalorder %v2168_v27, %v671_v56  ;;  %v696_v15 = vcvt.f32.s32 %v695_v1  ;;  %1439 = vmatpush3.bf16.msra.mxu0 %v935_v50  ;;  %1477 = vmatpush3.bf16.msra.mxu1 %v935_v50  ;;  %v710_v17 = vcvt.f32.s32 %v709_v7 }
 0x22c   : > { %vm805_vm0 = vcmp.eq.s32.totalorder %v2168_v27, %v685_v4  ;;  %v1390_v12 = vsel %vm804_vm15, 1.0, %v1834_v59  ;;  %v936_v31 = vpack.c.bf16 %v851_v63, %v850_v29 }
 0x22d   : > { %v1391_v30 = vsel %vm805_vm0, 1.0, %v1834_v59  ;;  %v852_v19 = vmul.f32 %v1390_v12, %v2446_v10  ;;  %v699_v37 = vadd.s32 %v698_v41, %v696_v15  ;;  %v713_v51 = vadd.s32 %v712_v42, %v710_v17 }
 0x22e   : > { %v853_v58 = vmul.f32 %v1391_v30, %v2452_v2  ;;  %1440 = vmatprep.subr.bf16.mxu0 %v936_v31  ;;  %1470 = vmatprep.subr.bf16.mxu1 %v936_v31  ;;  %v737_v22 = vpop.xlane.xlu1 %736  ;;  %v723_v9 = vpop.xlane.xlu0 %722  ;;  %v795_v12 = vcvt.f32.s32 %v2401_v44 }
 0x22f   : > { %868 = vst [vmem:[%s2078_s13 + $0x30] sm:$0xff] %v852_v19  ;;  %v884_v10 = vadd.f32 %v883_v24, %v852_v19  ;;  %vm806_vm4 = vcmp.eq.s32.totalorder %v2168_v27, %v699_v37  ;;  %v738_v2 = vcvt.f32.s32 %v737_v22  ;;  %1441 = vmatpush3.bf16.msra.mxu0 %v936_v31  ;;  %1478 = vmatpush3.bf16.msra.mxu1 %v936_v31  ;;  %v724_v36 = vcvt.f32.s32 %v723_v9 }
 0x230   : > { %869 = vst [vmem:[%s2078_s13 + $0x38] sm:$0xff] %v853_v58  ;;  %v1392_v11 = vsel %vm806_vm4, 1.0, %v1834_v59  ;;  %vm807_vm5 = vcmp.eq.s32.totalorder %v2168_v27, %v713_v51  ;;  %v937_v25 = vpack.c.bf16 %v853_v58, %v852_v19  ;;  %v796_v17 = vshll.u32 %v795_v12, 16 }
 0x231   : > { %v885_v39 = vadd.f32 %v884_v10, %v853_v58  ;;  %v854_v20 = vmul.f32 %v1392_v11, %v1376_v21  ;;  %v1393_v46 = vsel %vm807_vm5, 1.0, %v1834_v59  ;;  %v741_v16 = vadd.s32 %v740_v35, %v738_v2  ;;  %v1608_v10 = vld [vmem:[%s2055_s10 + $0x8] sm:$0xff]  }
 0x232   : > { %v855_v40 = vmul.f32 %v1393_v46, %v1377_v47  ;;  %v727_v26 = vadd.s32 %v726_v61, %v724_v36  ;;  %1442 = vmatprep.subr.bf16.mxu0 %v937_v25  ;;  %1471 = vmatprep.subr.bf16.mxu1 %v937_v25  ;;  %v751_v53 = vpop.xlane.xlu1 %750  ;;  %v765_v54 = vpop.xlane.xlu0 %764  ;;  %v1609_v2 = vld [vmem:[%s2055_s10 + $0x28] sm:$0xff]   ;;  %v1610_v36 = vld [vmem:[%s2055_s10 + $0x10] sm:$0xff]   ;;  %v878_v46 = vld [vmem:[%s2082_s9] sm:$0x1] }
 0x233   : > { %870 = vst [vmem:[%s2078_s13 + $0x40] sm:$0xff] %v854_v20  ;;  %v886_v62 = vadd.f32 %v885_v39, %v854_v20  ;;  %vm809_vm7 = vcmp.eq.s32.totalorder %v2168_v27, %v741_v16  ;;  %v752_v38 = vcvt.f32.s32 %v751_v53  ;;  %1443 = vmatpush3.bf16.msra.mxu0 %v937_v25  ;;  %1479 = vmatpush3.bf16.msra.mxu1 %v937_v25  ;;  %v766_v28 = vcvt.f32.s32 %v765_v54  ;;  %v1612_v25 = vld [vmem:[%s2055_s10 + $0x18] sm:$0xff]  }
 0x234   : > { %871 = vst [vmem:[%s2078_s13 + $0x48] sm:$0xff] %v855_v40  ;;  %v1395_v23 = vsel %vm809_vm7, 1.0, %v1834_v59  ;;  %vm808_vm8 = vcmp.eq.s32.totalorder %v2168_v27, %v727_v26  ;;  %v938_v33 = vpack.c.bf16 %v855_v40, %v854_v20  ;;  %v1613_v39 = vld [vmem:[%s2055_s10 + $0x38] sm:$0xff]  }
 0x235   : > { %v887_v29 = vadd.f32 %v886_v62, %v855_v40  ;;  %v857_v32 = vmul.f32 %v1395_v23, %v1379_v52  ;;  %v1394_v55 = vsel %vm808_vm8, 1.0, %v1834_v59  ;;  %v755_v41 = vadd.s32 %v2479_v5, %v752_v38 }
 0x236   : > { %v856_v42 = vmul.f32 %v1394_v55, %v1378_v34  ;;  %1444 = vmatprep.subr.bf16.mxu0 %v938_v33  ;;  %1472 = vmatprep.subr.bf16.mxu1 %v938_v33  ;;  %v458_v48 = vpop.permute.xlu1 %457  ;;  %v779_v3 = vpop.xlane.xlu0 %778  ;;  %v769_v18 = vadd.s32 %v768_v6, %v766_v28 }
 0x237   : > { %873 = vst [vmem:[%s2078_s13 + $0x58] sm:$0xff] %v857_v32  ;;  %vm810_vm9 = vcmp.eq.s32.totalorder %v2168_v27, %v755_v41  ;;  %1445 = vmatpush3.bf16.msra.mxu0 %v938_v33  ;;  %1480 = vmatpush3.bf16.msra.mxu1 %v938_v33  ;;  %v780_v60 = vcvt.f32.s32 %v779_v3  ;;  %vm476_vm10 = vcmp.eq.s32.totalorder %v2168_v27, %v458_v48 }
 0x238   : > { %872 = vst [vmem:[%s2078_s13 + $0x50] sm:$0xff] %v856_v42  ;;  %v888_v61 = vadd.f32 %v887_v29, %v856_v42  ;;  %v1396_v13 = vsel %vm810_vm9, 1.0, %v1834_v59  ;;  %v939_v35 = vpack.c.bf16 %v857_v32, %v856_v42  ;;  %v1382_v14 = vsel %vm476_vm10, 1.0, %v1834_v59 }
 0x239   : > { %v858_v49 = vmul.f32 %v1396_v13, %v1380_v43  ;;  %v783_v50 = vadd.s32 %v782_v8, %v780_v60  ;;  %vm811_vm12 = vcmp.eq.s32.totalorder %v2168_v27, %v769_v18 }
 0x23a   : > { %1446 = vmatprep.subr.bf16.mxu0 %v939_v35  ;;  %1473 = vmatprep.subr.bf16.mxu1 %v939_v35  ;;  %v889_v57 = vadd.f32 %v888_v61, %v857_v32  ;;  %v1397_v0 = vsel %vm811_vm12, 1.0, %v1834_v59 }
 0x23b   : > { %874 = vst [vmem:[%s2078_s13 + $0x60] sm:$0xff] %v858_v49  ;;  %vm812_vm11 = vcmp.eq.s32.totalorder %v2168_v27, %v783_v50  ;;  %1447 = vmatpush3.bf16.msra.mxu0 %v939_v35  ;;  %1481 = vmatpush3.bf16.msra.mxu1 %v939_v35 }
 0x23c   : > { %v1398_v63 = vsel %vm812_vm11, 1.0, %v1834_v59  ;;  %v890_v56 = vadd.f32 %v889_v57, %v858_v49 }
 0x23d   : > { %v860_v4 = vmul.f32 %v1398_v63, %v1382_v14 }
 0x23e   : > { %v455_v5 = vpop.permute.xlu0 %454 }
 0x23f   : > { %876 = vst [vmem:[%s2078_s13 + $0x70] sm:$0xff] %v860_v4  ;;  %vm475_vm13 = vcmp.eq.s32.totalorder %v2168_v27, %v455_v5 }
 0x240   : > { %v1381_v45 = vsel %vm475_vm13, 1.0, %v1834_v59 }
 0x241   : > { %v859_v1 = vmul.f32 %v1397_v0, %v1381_v45 }
 0x243   : > { %875 = vst [vmem:[%s2078_s13 + $0x68] sm:$0xff] %v859_v1  ;;  %v891_v7 = vadd.f32 %v890_v56, %v859_v1  ;;  %v940_v24 = vpack.c.bf16 %v859_v1, %v858_v49 }
 0x245   : > { %1448 = vmatprep.subr.bf16.mxu0 %v940_v24  ;;  %1474 = vmatprep.subr.bf16.mxu1 %v940_v24  ;;  %v892_v15 = vadd.f32 %v891_v7, %v860_v4 }
 0x246   : > { %1449 = vmatpush3.bf16.msra.mxu0 %v940_v24  ;;  %1482 = vmatpush3.bf16.msra.mxu1 %v940_v24 }
 0x26f   : > { %v793_v30 = vpop.xlane.xlu1 %792 }
 0x270   : > { %v794_v31 = vcvt.f32.s32 %v793_v30 }
 0x272   : > { %v797_v19 = vadd.s32 %v796_v17, %v794_v31 }
 0x273   : > { %v461_v58 = vpop.permute.xlu1 %460 }
 0x274   : > { %vm813_vm14 = vcmp.eq.s32.totalorder %v2168_v27, %v797_v19  ;;  %vm477_vm15 = vcmp.eq.s32.totalorder %v2168_v27, %v461_v58  ;;  %v1611_v27 = vld [vmem:[%s2055_s10 + $0x30] sm:$0xff]   ;;  %s1120_s10 = scalar_lea.sflag [#allocation4], %s2051_s30 }
 0x275   : > { %v1399_v37 = vsel %vm813_vm14, 1.0, %v1834_v59  ;;  %v1383_v21 = vsel %vm477_vm15, 1.0, %v1834_v59 }
 0x276   : > { %v861_v51 = vmul.f32 %v1399_v37, %v1383_v21 }
 0x278   : > { %877 = vst [vmem:[%s2078_s13 + $0x78] sm:$0xff] %v861_v51  ;;  %v893_v44 = vadd.f32 %v892_v15, %v861_v51  ;;  %v941_v22 = vpack.c.bf16 %v861_v51, %v860_v4 }
 0x27a   : > { %v894_v9 = vrot.slane %v893_v44, 4  ;;  %1450 = vmatprep.subr.bf16.mxu0 %v941_v22  ;;  %1475 = vmatprep.subr.bf16.mxu1 %v941_v22 }
 0x27b   : > { %1451 = vmatpush3.bf16.msra.mxu0 %v941_v22  ;;  %1483 = vmatpush3.bf16.msra.mxu1 %v941_v22 }
 0x27c   : > { %v895_v47 = vadd.f32 %v894_v9, %v893_v44 }
 0x27e   : > { %v896_v59 = vrot.slane %v895_v47, 2  ;;  %1453 = vmatmul.mubr.bf16.vlgmr.msra.gmra.mrb[0].mxu0 %v1608_v10  ;;  %1461 = vmatmul.mubr.bf16.vlgmr.msra.gmra.mrb[0].mxu1 %v1609_v2 }
 0x27f   : > { %1456 = vmatprep.mubr.bf16.mxu0 %v1610_v36  ;;  %1464 = vmatprep.mubr.bf16.mxu1 %v1611_v27 }
 0x280   : > { %v897_v11 = vadd.f32 %v896_v59, %v895_v47 }
 0x282   : > { %v898_v20 = vrot.slane %v897_v11, 1 }
 0x284   : > { %v899_v16 = vadd.f32 %v898_v20, %v897_v11 }
 0x286   : > { %1457 = vmatmul.mubr.bf16.gmra.mrb[4].mxu0 %v1612_v25  ;;  %1465 = vmatmul.mubr.bf16.gmra.mrb[4].mxu1 %v1613_v39  ;;  %v900_v34 = vadd.f32 %v899_v16, %v878_v46 }
 0x288   : > { %901 = vst [vmem:[%s2082_s9] sm:$0x1] %v900_v34 }
 0x289   : > { %1657 = shalt.err (!%p1654_p1)
}
 0x28a   : > { %s1658_s13 = scalar_lea.hbm %s2570_s24, 2048  ;;  %s1662_s12 = scalar_lea.hbm %s2748_s3, 8192 }
 0x28b   : > { %p1659_p8 = scmp.ne.s32.totalorder %s2570_s24, %s1658_s13  ;;  %p1663_p12 = scmp.lt.u32.totalorder %s2570_s24, %s2748_s3 }
 0x28c   : > { %p1664_p10 = scmp.lt.u32.totalorder %s1662_s12, %s1658_s13  ;;  %p1666_p3 = scmp.lt.u32.totalorder %s1658_s13, %s2570_s24 }
 0x28d   : > { %p1660_p11 = pnand %p1659_p8, %p2783_p6 }
 0x28e   : > { %p1665_p7 = por %p1664_p10, %p1663_p12 }
 0x28f   : > { %p1661_p4 = pneg %p1660_p11 }
 0x290   : > { %p1667_p0 = por %p1666_p3, %p1665_p7 }
 0x292   : > { %p1668_p2 = pnand %p1667_p0, %p1661_p4 }
 0x294   : > { %1671 = shalt.err (!%p1668_p2)
}
 0x295   : > { %s1836_s22 = smov 128   ;;  %s1837_s23 = smov 8   ;;  %v904_v52 = vld [vmem:[%s2080_s20 + $0x10] sm:$0xff]  ;;  %v902_v26 = vld [vmem:[%s2080_s20] sm:$0xff]  ;;  %v905_v38 = vld [vmem:[%s2080_s20 + $0x18] sm:$0xff] }
 0x296   : > { %1486 = dma.vmem_to_hbm [thread:$0]  (%p2783_p6), %s2573_s21, 2048, %s2570_s24, %s1120_s10, %s1836_s22, %s1836_s22, %s1837_s23  }
 0x297   : > { %v912_v40 = vld [vmem:[%s2080_s20 + $0x50] sm:$0xff]  ;;  %v910_v53 = vld [vmem:[%s2080_s20 + $0x40] sm:$0xff]  ;;  %v913_v23 = vld [vmem:[%s2080_s20 + $0x58] sm:$0xff]  ;;  %s1124_s16 = sand.u32 1, %s1926_s29   ;;  %s1419_s30 = sshll.u32 %s1814_s25, 11 }
 0x298   : > { %v903_v55 = vld [vmem:[%s2080_s20 + $0x8] sm:$0xff]  ;;  %v908_v49 = vld [vmem:[%s2080_s20 + $0x30] sm:$0xff]  ;;  %v906_v50 = vld [vmem:[%s2080_s20 + $0x20] sm:$0xff]  ;;  %s1160_s24 = sshll.u32 %s2080_s20, 4  ;;  %s1415_s21 = sshll.u32 %s1814_s25, 4  ;;  %s2640_s24 = int_to_ptr.vmem [resolvable:$true] %s1160_s24 }
 0x299   : > { %v911_v41 = vld [vmem:[%s2080_s20 + $0x48] sm:$0xff]  ;;  %v916_v18 = vld [vmem:[%s2080_s20 + $0x70] sm:$0xff]  ;;  %v914_v57 = vld [vmem:[%s2080_s20 + $0x60] sm:$0xff]  ;;  %s1176_s10 = sshll.u32 %s2082_s9, 4  ;;  %s2638_s11 = scalar_lea.hbm %s2749_s4, %s1419_s30  ;;  %s2649_s10 = int_to_ptr.vmem [resolvable:$true] %s1176_s10 }
 0x29a   : > { %v909_v56 = vld [vmem:[%s2080_s20 + $0x38] sm:$0xff]  ;;  %v907_v7 = vld [vmem:[%s2080_s20 + $0x28] sm:$0xff]  ;;  %s2647_s27 = scalar_lea.hbm %s2750_s5, %s1415_s21  ;;  %s2655_s13 = scalar_lea.sflag [#allocation7], %s1124_s16 }
 0x29b   : > { %v917_v4 = vld [vmem:[%s2080_s20 + $0x78] sm:$0xff]  ;;  %v915_v24 = vld [vmem:[%s2080_s20 + $0x68] sm:$0xff]  ;;  %s1672_s18 = scalar_lea.vmem %s2640_s24, 2048  ;;  %p2784_p9 = scmp.ne.s32.totalorder %s2778_s15, 0 }
 0x29c   : > { %p1673_p6 = scmp.ne.s32.totalorder %s2640_s24, %s1672_s18  ;;  %s1838_s6 = smov [#allocation6]  }
 0x29d   : > { %s1676_s12 = sshll.u32 %s1838_s6, 4  ;;  %s1677_s12 = int_to_ptr.vmem [resolvable:$false] %s1676_s12 }
 0x29e   : > { %p1674_p13 = pnand %p1673_p6, %p2784_p9  ;;  %s1678_s7 = scalar_lea.vmem %s1677_s12, 4096 }
 0x29f   : > { %p1679_p1 = scmp.lt.s32.totalorder %s2640_s24, %s1677_s12  ;;  %p1680_p8 = scmp.lt.s32.totalorder %s1678_s7, %s1672_s18 }
 0x2a0   : > { %p1675_p5 = pneg %p1674_p13 }
 0x2a1   : > { %p1681_p11 = por %p1680_p8, %p1679_p1 }
 0x2a3   : > { %p1682_p4 = pnand %p1681_p11, %p1675_p5 }
 0x351   : > { %v1454_v54 = vpop.f32.mrb[0].mxu0  ;;  %v1462_v62 = vpop.f32.mrb[0].mxu1 }
 0x352   : > { %v1089_v28 = vadd.f32 %v1454_v54, %v904_v52  ;;  %v1097_v33 = vadd.f32 %v1462_v62, %v912_v40  ;;  %v1024_v29 = vpop.f32.mrb[1].mxu0  ;;  %v1056_v32 = vpop.f32.mrb[1].mxu1 }
 0x353   : > { %v1087_v42 = vadd.f32 %v1024_v29, %v902_v26  ;;  %v1095_v48 = vadd.f32 %v1056_v32, %v910_v53  ;;  %v1455_v3 = vpop.f32.mrb[2].mxu0  ;;  %v1463_v6 = vpop.f32.mrb[2].mxu1 }
 0x354   : > { %1105 = vst [vmem:[%s2080_s20 + $0x10] sm:$0xff] %v1089_v28  ;;  %1113 = vst [vmem:[%s2080_s20 + $0x50] sm:$0xff] %v1097_v33  ;;  %v1090_v8 = vadd.f32 %v1455_v3, %v905_v38  ;;  %v1098_v60 = vadd.f32 %v1463_v6, %v913_v23  ;;  %v1027_v43 = vpop.f32.mrb[3].mxu0  ;;  %v1059_v61 = vpop.f32.mrb[3].mxu1 }
 0x355   : > { %1103 = vst [vmem:[%s2080_s20] sm:$0xff] %v1087_v42  ;;  %1111 = vst [vmem:[%s2080_s20 + $0x40] sm:$0xff] %v1095_v48  ;;  %v1088_v13 = vadd.f32 %v1027_v43, %v903_v55  ;;  %v1096_v35 = vadd.f32 %v1059_v61, %v911_v41 }
 0x356   : > { %1106 = vst [vmem:[%s2080_s20 + $0x18] sm:$0xff] %v1090_v8  ;;  %1114 = vst [vmem:[%s2080_s20 + $0x58] sm:$0xff] %v1098_v60 }
 0x357   : > { %1104 = vst [vmem:[%s2080_s20 + $0x8] sm:$0xff] %v1088_v13  ;;  %1112 = vst [vmem:[%s2080_s20 + $0x48] sm:$0xff] %v1096_v35 }
 0x359   : > { %v1458_v14 = vpop.f32.mrb[4].mxu0  ;;  %v1466_v63 = vpop.f32.mrb[4].mxu1 }
 0x35a   : > { %v1093_v5 = vadd.f32 %v1458_v14, %v908_v49  ;;  %v1101_v0 = vadd.f32 %v1466_v63, %v916_v18  ;;  %v1040_v45 = vpop.f32.mrb[5].mxu0  ;;  %v1072_v1 = vpop.f32.mrb[5].mxu1 }
 0x35b   : > { %v1091_v15 = vadd.f32 %v1040_v45, %v906_v50  ;;  %v1099_v12 = vadd.f32 %v1072_v1, %v914_v57  ;;  %v1459_v30 = vpop.f32.mrb[6].mxu0  ;;  %v1467_v17 = vpop.f32.mrb[6].mxu1 }
 0x35c   : > { %1109 = vst [vmem:[%s2080_s20 + $0x30] sm:$0xff] %v1093_v5  ;;  %1117 = vst [vmem:[%s2080_s20 + $0x70] sm:$0xff] %v1101_v0  ;;  %v1094_v31 = vadd.f32 %v1459_v30, %v909_v56  ;;  %v1102_v19 = vadd.f32 %v1467_v17, %v917_v4  ;;  %v1043_v58 = vpop.f32.mrb[7].mxu0  ;;  %v1075_v37 = vpop.f32.mrb[7].mxu1 }
 0x35d   : > { %1107 = vst [vmem:[%s2080_s20 + $0x20] sm:$0xff] %v1091_v15  ;;  %1115 = vst [vmem:[%s2080_s20 + $0x60] sm:$0xff] %v1099_v12  ;;  %v1092_v21 = vadd.f32 %v1043_v58, %v907_v7  ;;  %v1100_v51 = vadd.f32 %v1075_v37, %v915_v24 }
 0x35e   : > { %1110 = vst [vmem:[%s2080_s20 + $0x38] sm:$0xff] %v1094_v31  ;;  %1118 = vst [vmem:[%s2080_s20 + $0x78] sm:$0xff] %v1102_v19 }
 0x35f   : > { %1108 = vst [vmem:[%s2080_s20 + $0x28] sm:$0xff] %v1092_v21  ;;  %1116 = vst [vmem:[%s2080_s20 + $0x68] sm:$0xff] %v1100_v51 }
 0x360   : > { %1685 = shalt.err (!%p1682_p4)
}
 0x361   : > { %s1686_s20 = scalar_lea.hbm %s2638_s11, 2048  ;;  %s1690_s16 = scalar_lea.hbm %s2749_s4, 4096 }
 0x362   : > { %p1687_p12 = scmp.ne.s32.totalorder %s2638_s11, %s1686_s20  ;;  %p1691_p3 = scmp.lt.u32.totalorder %s2638_s11, %s2749_s4 }
 0x363   : > { %p1692_p0 = scmp.lt.u32.totalorder %s1690_s16, %s1686_s20  ;;  %p1694_p6 = scmp.lt.u32.totalorder %s1686_s20, %s2638_s11 }
 0x364   : > { %p1688_p10 = pnand %p1687_p12, %p2784_p9 }
 0x365   : > { %p1693_p2 = por %p1692_p0, %p1691_p3 }
 0x366   : > { %p1689_p7 = pneg %p1688_p10 }
 0x367   : > { %p1695_p13 = por %p1694_p6, %p1693_p2 }
 0x369   : > { %p1696_p5 = pnand %p1695_p13, %p1689_p7 }
 0x36b   : > { %1699 = shalt.err (!%p1696_p5)
}
 0x36c   : > { %1487 = dma.vmem_to_hbm [thread:$0]  (%p2784_p9), %s2640_s24, 2048, %s2638_s11, %s2655_s13, %s1836_s22, %s1836_s22, %s1837_s23  }
 0x36d   : > { %s1700_s26 = scalar_lea.vmem %s2649_s10, 16  ;;  %s1839_s14 = smov [#allocation8]  }
 0x36e   : > { %p1701_p1 = scmp.ne.s32.totalorder %s2649_s10, %s1700_s26  ;;  %s1704_s25 = sshll.u32 %s1839_s14, 4  ;;  %s1705_s25 = int_to_ptr.vmem [resolvable:$false] %s1704_s25 }
 0x36f   : > { %s1706_s9 = scalar_lea.vmem %s1705_s25, 32  ;;  %p1707_p4 = scmp.lt.s32.totalorder %s2649_s10, %s1705_s25 }
 0x370   : > { %p1702_p8 = pnand %p1701_p1, %p2784_p9  ;;  %p1708_p12 = scmp.lt.s32.totalorder %s1706_s9, %s1700_s26 }
 0x372   : > { %p1703_p11 = pneg %p1702_p8  ;;  %p1709_p10 = por %p1708_p12, %p1707_p4 }
 0x374   : > { %p1710_p7 = pnand %p1709_p10, %p1703_p11 }
 0x376   : > { %1713 = shalt.err (!%p1710_p7)
}
 0x377   : > { %s1714_s22 = scalar_lea.hbm %s2647_s27, 16  ;;  %s1718_s11 = scalar_lea.hbm %s2750_s5, 32 }
 0x378   : > { %p1715_p3 = scmp.ne.s32.totalorder %s2647_s27, %s1714_s22  ;;  %p1719_p6 = scmp.lt.u32.totalorder %s2647_s27, %s2750_s5 }
 0x379   : > { %p1720_p13 = scmp.lt.u32.totalorder %s1718_s11, %s1714_s22  ;;  %p1722_p1 = scmp.lt.u32.totalorder %s1714_s22, %s2647_s27 }
 0x37a   : > { %p1716_p0 = pnand %p1715_p3, %p2784_p9 }
 0x37b   : > { %p1721_p5 = por %p1720_p13, %p1719_p6 }
 0x37c   : > { %p1717_p2 = pneg %p1716_p0 }
 0x37d   : > { %p1723_p8 = por %p1722_p1, %p1721_p5 }
 0x37f   : > { %p1724_p11 = pnand %p1723_p8, %p1717_p2 }
 0x381   : > { %1727 = shalt.err (!%p1724_p11)
}
 0x382   : > { %1488 = dma.vmem_to_hbm [thread:$0]  (%p2784_p9), %s2649_s10, 16, %s2647_s27, %s2655_s13  }
 0x383 PF: > { %s2785_s12 = sld [smem:[#allocation13_spill]]  ;;  %p1507_p4 = scmp.ge.s32.totalorder %s1826_s28, 2 }
 0x384   : > { %p2786_p12 = scmp.ne.s32.totalorder %s2775_s8, 0 }
 0x386   : > { %p1497_p10 = pnand %p1507_p4, %p2786_p12 }
 0x389   : > { %s1188_s7 = sand.u32 1, %s2785_s12  }
 0x38a   : > { %s1189_s20 = scalar_lea.sflag [#allocation4], %s1188_s7 }
 0x38b   : > { %1777 = dma.done.wait (!%p1497_p10), %s1189_s20, 2048  }
 0x38c   : > { %1779 = vsyncadd (!%p1497_p10), %s1189_s20, 4294965248  ;;  %s2787_s29 = sadd.s32 4294967294, %s1826_s28   ;;  %p2788_p7 = scmp.ne.s32.totalorder %s2779_s17, 0 }
 0x38d   : > { %s1197_s0 = sand.u32 1, %s2787_s29  }
 0x38e   : > { %p1500_p3 = pnand %p1507_p4, %p2788_p7  ;;  %s1198_s15 = scalar_lea.sflag [#allocation7], %s1197_s0 }
 0x390   : > { %1781 = dma.done.wait (!%p1500_p3), %s1198_s15, 2064  }
 0x391   : > { %1783 = vsyncadd (!%p1500_p3), %s1198_s15, 4294965232  ;;  %s25_s28 = sadd.s32 1, %s1826_s28   ;;  %s2789_s10 = sld [smem:[#allocation12_spill]] }
 0x392   : > { %p22_p9 = scmp.ge.s32.totalorder %s25_s28, 6   ;;  %s2790_s20 = sld [smem:[#allocation21_spill]] }
 0x393   : > { %s2791_s21 = sld [smem:[#allocation14_spill]]  ;;  %s2792_s22 = sld [smem:[#allocation15_spill]] }
 0x394   : > { %s2793_s23 = sld [smem:[#allocation20_spill]]  ;;  %s2794_s24 = sld [smem:[#allocation16_spill]] }
 0x395   : > { %s2795_s25 = sld [smem:[#allocation17_spill]]  ;;  %s2796_s26 = sld [smem:[#allocation18_spill]] }
 0x396   : > { %s2797_s27 = sld [smem:[#allocation19_spill]]  ;;  %s2798_s18 = smov %s1790_s19 }
 0x397   : > { %s2799_s19 = smov %s2789_s10  ;;  %24 = sbr.rel (!%p22_p9) target bundleno = 13 (0xd), region = 119 }
 0x39e   :  { %1211 = vsyncpa [#allocation3], 1 }
 0x39f   :  { %1213 = vsyncpa [#allocation3 + $0x1], 1 }
 0x3a0   :  { %1214 = vsyncpa [#allocation4], 1 }
 0x3a1   :  { %1216 = vsyncpa [#allocation4 + $0x1], 1 }
 0x3a2   :  { %1217 = vsyncpa [#allocation7], 1 }
 0x3a3   :  { %1219 = vsyncpa [#allocation7 + $0x1], 1 }

</bundles_post_ra>
